<compile_context>
chip_gen: v6e
topology: v6e:2x2x1
jax: 0.10.0
libtpu: 0.0.40
codegen_flags: <defaults>
</compile_context>

<pallas_src>
import functools
import math

import jax
import jax.numpy as jnp
from jax.experimental import pallas as pl
from jax.experimental.pallas import tpu as pltpu


def _block_diag(blocks):
    """Exact block-diagonal stacking (pure layout prep, done once in the wrapper)."""
    rows = sum(b.shape[0] for b in blocks)
    cols = sum(b.shape[1] for b in blocks)
    out = jnp.zeros((rows, cols), blocks[0].dtype)
    ro = co = 0
    for b in blocks:
        out = out.at[ro:ro + b.shape[0], co:co + b.shape[1]].set(b)
        ro += b.shape[0]
        co += b.shape[1]
    return out


def _proj_sum_kernel(n_emb, d_out, attnnet, nonlin,
                     idx_ref, tcat_ref, wblk_ref, bcat_ref, weff_ref, beff_ref,
                     out_ref):
    """One batch tile.

    idx_ref  : (B_tile, 1)  int32   -- entrez indices for this tile
    tcat_ref : (V, n_emb*Din)       -- frozen tables concatenated along features
    wblk_ref : (n_emb*Din, n_emb*Dout) -- block-diagonal stacked projector weights
    bcat_ref : (1, n_emb*Dout)      -- concatenated projector biases
    weff_ref : (1, Dout)            -- folded attention weight  (W0 @ W1)^T
    beff_ref : (1, 1)               -- folded attention bias    b0 @ W1 + b1
    out_ref  : (B_tile, Dout)
    """
    b_tile = idx_ref.shape[0]
    v = tcat_ref.shape[0]
    f32 = jnp.float32

    # ---- batched gather of all n_emb embedding rows as one exact one-hot matmul
    idx = idx_ref[...]                                              # (B_tile, 1) i32
    iota = jax.lax.broadcasted_iota(jnp.int32, (b_tile, v), 1)      # (B_tile, V)
    onehot = (idx == iota).astype(tcat_ref.dtype)                   # (B_tile, V)
    rows = jnp.dot(onehot, tcat_ref[...],
                   preferred_element_type=f32)                      # (B_tile, n_emb*Din)

    # ---- all n_emb projections in ONE MXU call (block-diagonal weight) ----
    P = jnp.dot(rows, wblk_ref[...],
                preferred_element_type=f32) + bcat_ref[...]         # (B_tile, n_emb*Dout)

    def chunk(e):
        return P[:, e * d_out:(e + 1) * d_out]                      # (B_tile, Dout)

    if attnnet == "none":
        out = chunk(0)
        for e in range(1, n_emb):
            out = out + chunk(e)
    else:
        # Folded attention: logit_e = P_e @ (W0 @ W1) + (b0 @ W1 + b1)
        # computed as a lane reduction (VPU/XLU), not a tiny-N MXU matmul.
        weff = weff_ref[...]                                        # (1, Dout)
        beff = beff_ref[...]                                        # (1, 1)
        logits = [jnp.sum(chunk(e) * weff, axis=-1, keepdims=True) + beff
                  for e in range(n_emb)]                            # n_emb x (B_tile, 1)

        if attnnet.endswith("_gating"):
            w = [jax.nn.sigmoid(l) for l in logits]
        else:  # *_softmax over the n_emb axis
            m = logits[0]
            for e in range(1, n_emb):
                m = jnp.maximum(m, logits[e])
            ex = [jnp.exp(l - m) for l in logits]
            denom = ex[0]
            for e in range(1, n_emb):
                denom = denom + ex[e]
            inv = pl.reciprocal(denom, approx=True)                 # EUP slot
            w = [x * inv for x in ex]

        out = chunk(0) * w[0]
        for e in range(1, n_emb):
            out = out + chunk(e) * w[e]

    if nonlin == "relu":
        out = jnp.maximum(out, 0.0)
    out_ref[...] = out.astype(out_ref.dtype)


def proj_sum_embedder(idx, tables, Wp, bp, W0, b0, W1, b1, *,
                      attnnet="no_dep_softmax", nonlin="relu", block_b=128):
    """Batched ProjSumEmbedder forward.

    idx    : (B,) int32 entrez indices (already mapped by entrez_to_idx)
    tables : list of n_emb frozen embedding tables, each (V, Din)
    Wp     : (n_emb, Din, Dout)  projector weights (transposed vs torch Linear)
    bp     : (n_emb, Dout)       projector biases
    W0,b0  : Linear(Dout, 2);  W1,b1 : Linear(2, 1)   (no_dep_* attention)
    returns: (B, Dout) float32; each row equals the torch forward for that entrez.
    """
    n_emb = len(tables)
    V, Din = tables[0].shape
    Dout = Wp.shape[-1]
    B = idx.shape[0]

    # ---------- wrapper-side, data-independent prep (exact, done once) ----------
    tcat = jnp.concatenate(tables, axis=1)                       # (V, n_emb*Din)
    wblk = _block_diag([Wp[e] for e in range(n_emb)])            # (n_emb*Din, n_emb*Dout)
    bcat = bp.reshape(1, n_emb * Dout)                           # (1, n_emb*Dout)
    # Fold the two attention linears (no nonlinearity between them => exact).
    w_eff = (W0 @ W1).reshape(1, Dout)                           # (1, Dout)
    b_eff = (b0 @ W1 + b1).reshape(1, 1)                         # (1, 1)

    # Pad the batch to a multiple of block_b (pad with valid index 0, sliced off).
    Bp = pl.cdiv(B, block_b) * block_b
    idx_pad = jnp.pad(idx.astype(jnp.int32), (0, Bp - B)).reshape(Bp, 1)

    kernel = functools.partial(_proj_sum_kernel, n_emb, Dout, attnnet, nonlin)

    resident = lambda i: (0, 0)          # weights: same block every step -> VMEM resident
    grid_spec = pltpu.PrefetchScalarGridSpec(
        num_scalar_prefetch=0,
        grid=(Bp // block_b,),
        in_specs=[
            pl.BlockSpec((block_b, 1), lambda i: (i, 0)),        # idx tile
            pl.BlockSpec(tcat.shape, resident),
            pl.BlockSpec(wblk.shape, resident),
            pl.BlockSpec(bcat.shape, resident),
            pl.BlockSpec(w_eff.shape, resident),
            pl.BlockSpec(b_eff.shape, resident),
        ],
        out_specs=pl.BlockSpec((block_b, Dout), lambda i: (i, 0)),
    )

    out = pl.pallas_call(
        kernel,
        grid_spec=grid_spec,
        out_shape=jax.ShapeDtypeStruct((Bp, Dout), jnp.float32),
        compiler_params=pltpu.CompilerParams(
            dimension_semantics=("parallel",)),   # batch tiles shard across v7x's 2 TCs
    )(idx_pad, tcat, wblk, bcat, w_eff, b_eff)

    return out[:B]


def _reference(idx, tables, Wp, bp, W0, b0, W1, b1, attnnet, nonlin):
    hi = jax.lax.Precision.HIGHEST
    rows = jnp.stack([t[idx] for t in tables], axis=1)                 # (B, n_emb, Din)
    P = jnp.einsum("bed,edo->beo", rows, Wp, precision=hi) + bp[None]  # (B, n_emb, Dout)
    if attnnet == "none":
        out = P.sum(axis=1)
    else:
        a0 = jnp.einsum("beo,ot->bet", P, W0, precision=hi) + b0
        a1 = jnp.einsum("bet,tu->beu", a0, W1, precision=hi) + b1      # (B, n_emb, 1)
        if attnnet.endswith("_gating"):
            w = jax.nn.sigmoid(a1)
        else:
            w = jax.nn.softmax(a1, axis=1)
        out = (P * w).sum(axis=1)
    if nonlin == "relu":
        out = jnp.maximum(out, 0.0)
    return out


if __name__ == "__main__":
    # Small shapes consistent with the module's __init__.
    V = 16          # args.entrez_size
    Din = 32        # args.original_embed_sz
    Dout = 32       # args.proj_embed_sz
    n_emb = 3       # len(args.embedding_type_list)
    B = 200         # batch of entrez lookups (padded to 256 = 2 tiles of 128)
    nonlin = "relu"

    key = jax.random.PRNGKey(0)
    keys = jax.random.split(key, 4 + n_emb)

    # SingleEmbedder init: uniform(-bound, bound), bound = sqrt(3 / Din)
    bound = math.sqrt(3.0 / Din)
    tables = [
        jax.random.uniform(keys[e], (V, Din), jnp.float32, -bound, bound)
        for e in range(n_emb)
    ]

    # Projectors: Linear(Din, Dout), xavier-uniform weight, zero bias.
    xav_p = math.sqrt(6.0 / (Din + Dout))
    Wp = jax.random.uniform(keys[n_emb], (n_emb, Din, Dout), jnp.float32, -xav_p, xav_p)
    bp = jnp.zeros((n_emb, Dout), jnp.float32)

    # Attention: Linear(Dout, 2) and Linear(2, 1), xavier-uniform, zero bias.
    xav_0 = math.sqrt(6.0 / (Dout + 2))
    W0 = jax.random.uniform(keys[n_emb + 1], (Dout, 2), jnp.float32, -xav_0, xav_0)
    b0 = jnp.zeros((1, 2), jnp.float32)
    xav_1 = math.sqrt(6.0 / (2 + 1))
    W1 = jax.random.uniform(keys[n_emb + 2], (2, 1), jnp.float32, -xav_1, xav_1)
    b1 = jnp.zeros((1, 1), jnp.float32)

    idx = jax.random.randint(keys[n_emb + 3], (B,), 0, V, dtype=jnp.int32)

    # Tolerance is 1e-3 because the softmax denominator uses the approximate
    # EUP reciprocal (pl.reciprocal(approx=True)); set approx=False for 1e-5 parity.
    for attnnet in ("no_dep_softmax", "no_dep_gating", "none"):
        out = proj_sum_embedder(idx, tables, Wp, bp, W0, b0, W1, b1,
                                attnnet=attnnet, nonlin=nonlin)
        out = jax.block_until_ready(out)
        ref = _reference(idx, tables, Wp, bp, W0, b0, W1, b1, attnnet, nonlin)
        assert out.shape == (B, Dout), (attnnet, out.shape)
        assert jnp.allclose(out, ref, atol=1e-3, rtol=1e-3), (attnnet, out, ref)

    print("KERNEL_OK")
</pallas_src>

<mosaic_0001>
module attributes {stable_mosaic.version = 11 : i64} {
  func.func @_proj_sum_kernel(%arg0: i32, %arg1: memref<128x1xi32, #tpu.memory_space<vmem>>, %arg2: memref<16x96xf32, #tpu.memory_space<vmem>>, %arg3: memref<96x96xf32, #tpu.memory_space<vmem>>, %arg4: memref<1x96xf32, #tpu.memory_space<vmem>>, %arg5: memref<1x32xf32, #tpu.memory_space<vmem>>, %arg6: memref<1x1xf32, #tpu.memory_space<vmem>>, %arg7: memref<128x32xf32, #tpu.memory_space<vmem>>) attributes {dimension_semantics = [#tpu.dimension_semantics<parallel>], iteration_bounds = array<i64: 2>, scalar_prefetch = 0 : i64, scratch_operands = 0 : i64, tpu.core_type = #tpu.core_type<tc>, window_params = [{transform_indices = @transform_0, window_bounds = array<i64: 128, 1>}, {pipeline_mode = #tpu.pipeline_mode<synchronous>, transform_indices = @transform_1, window_bounds = array<i64: 16, 96>}, {pipeline_mode = #tpu.pipeline_mode<synchronous>, transform_indices = @transform_2, window_bounds = array<i64: 96, 96>}, {pipeline_mode = #tpu.pipeline_mode<synchronous>, transform_indices = @transform_3, window_bounds = array<i64: 1, 96>}, {pipeline_mode = #tpu.pipeline_mode<synchronous>, transform_indices = @transform_4, window_bounds = array<i64: 1, 32>}, {pipeline_mode = #tpu.pipeline_mode<synchronous>, transform_indices = @transform_5, window_bounds = array<i64: 1, 1>}, {transform_indices = @transform_6, window_bounds = array<i64: 128, 32>}]} {
    %c0 = arith.constant 0 : index
    %c0_0 = arith.constant 0 : index
    %0 = vector.load %arg1[%c0, %c0_0] : memref<128x1xi32, #tpu.memory_space<vmem>>, vector<128x1xi32>
    %1 = tpu.iota {dimensions = array<i32: 1>} : vector<128x16xi32>
    %2 = vector.broadcast %0 : vector<128x1xi32> to vector<128x16xi32>
    %3 = arith.cmpi eq, %2, %1 : vector<128x16xi32>
    %4 = arith.extui %3 : vector<128x16xi1> to vector<128x16xi32>
    %5 = arith.sitofp %4 : vector<128x16xi32> to vector<128x16xf32>
    %c0_1 = arith.constant 0 : index
    %c0_2 = arith.constant 0 : index
    %6 = vector.load %arg2[%c0_1, %c0_2] : memref<16x96xf32, #tpu.memory_space<vmem>>, vector<16x96xf32>
    %cst = arith.constant dense<0.000000e+00> : vector<128x96xf32>
    %7 = tpu.matmul %5, %6, %cst {dimension_numbers = #tpu.dot_dimension_numbers<[1], [0], [0], [1], [0, 0, 1, 1], [], []>} : vector<128x16xf32>, vector<16x96xf32>, vector<128x96xf32> -> vector<128x96xf32>
    %c0_3 = arith.constant 0 : index
    %c0_4 = arith.constant 0 : index
    %8 = vector.load %arg3[%c0_3, %c0_4] : memref<96x96xf32, #tpu.memory_space<vmem>>, vector<96x96xf32>
    %cst_5 = arith.constant dense<0.000000e+00> : vector<128x96xf32>
    %9 = tpu.matmul %7, %8, %cst_5 {dimension_numbers = #tpu.dot_dimension_numbers<[1], [0], [0], [1], [0, 0, 1, 1], [], []>} : vector<128x96xf32>, vector<96x96xf32>, vector<128x96xf32> -> vector<128x96xf32>
    %c0_6 = arith.constant 0 : index
    %c0_7 = arith.constant 0 : index
    %10 = vector.load %arg4[%c0_6, %c0_7] : memref<1x96xf32, #tpu.memory_space<vmem>>, vector<1x96xf32>
    %11 = vector.broadcast %10 : vector<1x96xf32> to vector<128x96xf32>
    %12 = arith.addf %9, %11 : vector<128x96xf32>
    %c0_8 = arith.constant 0 : index
    %c0_9 = arith.constant 0 : index
    %13 = vector.load %arg5[%c0_8, %c0_9] : memref<1x32xf32, #tpu.memory_space<vmem>>, vector<1x32xf32>
    %c0_10 = arith.constant 0 : index
    %c0_11 = arith.constant 0 : index
    %14 = vector.load %arg6[%c0_10, %c0_11] : memref<1x1xf32, #tpu.memory_space<vmem>>, vector<1x1xf32>
    %15 = vector.extract_strided_slice %12 {offsets = [0, 0], sizes = [128, 32], strides = [1, 1]} : vector<128x96xf32> to vector<128x32xf32>
    %16 = vector.broadcast %13 : vector<1x32xf32> to vector<128x32xf32>
    %17 = arith.mulf %15, %16 : vector<128x32xf32>
    %cst_12 = arith.constant dense<0.000000e+00> : vector<128xf32>
    %18 = vector.multi_reduction <add>, %17, %cst_12 [1] : vector<128x32xf32> to vector<128xf32>
    %19 = vector.shape_cast %18 : vector<128xf32> to vector<128x1xf32>
    %20 = vector.broadcast %14 : vector<1x1xf32> to vector<128x1xf32>
    %21 = arith.addf %19, %20 : vector<128x1xf32>
    %22 = vector.extract_strided_slice %12 {offsets = [0, 32], sizes = [128, 32], strides = [1, 1]} : vector<128x96xf32> to vector<128x32xf32>
    %23 = vector.broadcast %13 : vector<1x32xf32> to vector<128x32xf32>
    %24 = arith.mulf %22, %23 : vector<128x32xf32>
    %cst_13 = arith.constant dense<0.000000e+00> : vector<128xf32>
    %25 = vector.multi_reduction <add>, %24, %cst_13 [1] : vector<128x32xf32> to vector<128xf32>
    %26 = vector.shape_cast %25 : vector<128xf32> to vector<128x1xf32>
    %27 = vector.broadcast %14 : vector<1x1xf32> to vector<128x1xf32>
    %28 = arith.addf %26, %27 : vector<128x1xf32>
    %29 = vector.extract_strided_slice %12 {offsets = [0, 64], sizes = [128, 32], strides = [1, 1]} : vector<128x96xf32> to vector<128x32xf32>
    %30 = vector.broadcast %13 : vector<1x32xf32> to vector<128x32xf32>
    %31 = arith.mulf %29, %30 : vector<128x32xf32>
    %cst_14 = arith.constant dense<0.000000e+00> : vector<128xf32>
    %32 = vector.multi_reduction <add>, %31, %cst_14 [1] : vector<128x32xf32> to vector<128xf32>
    %33 = vector.shape_cast %32 : vector<128xf32> to vector<128x1xf32>
    %34 = vector.broadcast %14 : vector<1x1xf32> to vector<128x1xf32>
    %35 = arith.addf %33, %34 : vector<128x1xf32>
    %36 = arith.maximumf %21, %28 : vector<128x1xf32>
    %37 = arith.maximumf %36, %35 : vector<128x1xf32>
    %38 = arith.subf %21, %37 : vector<128x1xf32>
    %39 = math.exp %38 : vector<128x1xf32>
    %40 = arith.subf %28, %37 : vector<128x1xf32>
    %41 = math.exp %40 : vector<128x1xf32>
    %42 = arith.subf %35, %37 : vector<128x1xf32>
    %43 = math.exp %42 : vector<128x1xf32>
    %44 = arith.addf %39, %41 : vector<128x1xf32>
    %45 = arith.addf %44, %43 : vector<128x1xf32>
    %46 = tpu.reciprocal %45 {approx = true} : vector<128x1xf32> -> vector<128x1xf32>
    %47 = arith.mulf %39, %46 : vector<128x1xf32>
    %48 = arith.mulf %41, %46 : vector<128x1xf32>
    %49 = arith.mulf %43, %46 : vector<128x1xf32>
    %50 = vector.extract_strided_slice %12 {offsets = [0, 0], sizes = [128, 32], strides = [1, 1]} : vector<128x96xf32> to vector<128x32xf32>
    %51 = vector.broadcast %47 : vector<128x1xf32> to vector<128x32xf32>
    %52 = arith.mulf %50, %51 : vector<128x32xf32>
    %53 = vector.extract_strided_slice %12 {offsets = [0, 32], sizes = [128, 32], strides = [1, 1]} : vector<128x96xf32> to vector<128x32xf32>
    %54 = vector.broadcast %48 : vector<128x1xf32> to vector<128x32xf32>
    %55 = arith.mulf %53, %54 : vector<128x32xf32>
    %56 = arith.addf %52, %55 : vector<128x32xf32>
    %57 = vector.extract_strided_slice %12 {offsets = [0, 64], sizes = [128, 32], strides = [1, 1]} : vector<128x96xf32> to vector<128x32xf32>
    %58 = vector.broadcast %49 : vector<128x1xf32> to vector<128x32xf32>
    %59 = arith.mulf %57, %58 : vector<128x32xf32>
    %60 = arith.addf %56, %59 : vector<128x32xf32>
    %cst_15 = arith.constant 0.000000e+00 : f32
    %61 = vector.broadcast %cst_15 : f32 to vector<128x32xf32>
    %62 = arith.maximumf %60, %61 : vector<128x32xf32>
    %c0_16 = arith.constant 0 : index
    %c0_17 = arith.constant 0 : index
    %63 = vector.load %arg7[%c0_16, %c0_17] : memref<128x32xf32, #tpu.memory_space<vmem>>, vector<128x32xf32>
    tpu.vector_store %arg7[%c0_16, %c0_17], %62 {strides = array<i32>} : memref<128x32xf32, #tpu.memory_space<vmem>>, vector<128x32xf32>,
    return
  }
  func.func @transform_0(%arg0: i32) -> (i32, i32) {
    %c0_i32 = arith.constant 0 : i32
    %c0_i32_0 = arith.constant 0 : i32
    return %arg0, %c0_i32 : i32, i32
  }
  func.func @transform_1(%arg0: i32) -> (i32, i32) {
    %c0_i32 = arith.constant 0 : i32
    %c0_i32_0 = arith.constant 0 : i32
    %c0_i32_1 = arith.constant 0 : i32
    return %c0_i32, %c0_i32_0 : i32, i32
  }
  func.func @transform_2(%arg0: i32) -> (i32, i32) {
    %c0_i32 = arith.constant 0 : i32
    %c0_i32_0 = arith.constant 0 : i32
    %c0_i32_1 = arith.constant 0 : i32
    return %c0_i32, %c0_i32_0 : i32, i32
  }
  func.func @transform_3(%arg0: i32) -> (i32, i32) {
    %c0_i32 = arith.constant 0 : i32
    %c0_i32_0 = arith.constant 0 : i32
    %c0_i32_1 = arith.constant 0 : i32
    return %c0_i32, %c0_i32_0 : i32, i32
  }
  func.func @transform_4(%arg0: i32) -> (i32, i32) {
    %c0_i32 = arith.constant 0 : i32
    %c0_i32_0 = arith.constant 0 : i32
    %c0_i32_1 = arith.constant 0 : i32
    return %c0_i32, %c0_i32_0 : i32, i32
  }
  func.func @transform_5(%arg0: i32) -> (i32, i32) {
    %c0_i32 = arith.constant 0 : i32
    %c0_i32_0 = arith.constant 0 : i32
    %c0_i32_1 = arith.constant 0 : i32
    return %c0_i32, %c0_i32_0 : i32, i32
  }
  func.func @transform_6(%arg0: i32) -> (i32, i32) {
    %c0_i32 = arith.constant 0 : i32
    %c0_i32_0 = arith.constant 0 : i32
    return %arg0, %c0_i32 : i32, i32
  }
}

</mosaic_0001>

<bundles_post_ra>
// kernel: tpu_custom_call.1
= control target key start
LH: loop header
LB: loop body
LE: loop exit
PB: predicated region body
PF: predicated region fallthrough
CT: control target
= control target key end

     0   :  { %s2379_s23 = smov 0   ;;  %s3325_s0 = inlined_call_operand.vmem [shape: s32[256,1], index: 0, kind: input, shape index: {}]   ;;  %s3326_s1 = inlined_call_operand.vmem [shape: f32[16,96], index: 1, kind: input, shape index: {}]   ;;  %s3327_s2 = inlined_call_operand.vmem [shape: f32[96,96], index: 2, kind: input, shape index: {}]   ;;  %s3328_s3 = inlined_call_operand.vmem [shape: f32[1,96], index: 3, kind: input, shape index: {}]   ;;  %s3329_s4 = inlined_call_operand.vmem [shape: f32[1,32], index: 4, kind: input, shape index: {}]   ;;  %s3330_s5 = inlined_call_operand.<no memory space> [shape: f32[1,1], index: 5, kind: input, shape index: {}]   ;;  %s3331_s6 = inlined_call_operand.vmem [shape: f32[256,32], index: 6, kind: output, shape index: {}]  }
   0x1   :  { %v11_v0 = vstv %s3330_s5 }
   0x2   :  { %12 = vst [vmem:[#allocation2] sm:$0x1] %v11_v0 }
   0x3 LB: > { %s1977_s24 = sadd.s32 4294967295, %s2334_s23   ;;  %p1981_p0 = scmp.ge.s32.totalorder %s2334_s23, 1  ;;  %s2334_s23 = sphi %s2379_s23, %s18_s23  }
   0x4   : > { %p215_p1 = scmp.lt.s32.totalorder %s2334_s23, 3 }
   0x6   : > { %p216_p2 = pnand %p1981_p0, %p215_p1 }
   0x7   : > { %s1982_s25 = sshll.u32 (!%p216_p2), %s1977_s24, 4  ;;  %s2338_s13 = smov (!%p216_p2), 32  }
   0x8   : > { %219 = sbr.rel (%p216_p2) target bundleno = 1595 (0x63b), region = 44  ;;  %p246_p3 = scmp.lt.s32.totalorder (!%p216_p2), %s1982_s25, 31 }
   0x9   : > { %s2339_s14 = smov (!%p216_p2), 64   ;;  %s2340_s17 = smov (!%p216_p2), 96  }
   0xd   : > { %v2336_v1 = vmov 0   ;;  %s3333_s25 = smov (!%p246_p3, %s1982_s25), 31  ;;  %v372_v2 = vld [vmem:[%s3326_s1 + $0x8] sm:$0xff]  ;;  %v371_v7 = vld [vmem:[%s3326_s1] sm:$0xff]  ;;  %v578_v20 = vld [vmem:[%s3327_s2 + $0x58] sm:$0xff]  ;;  %v273_v31 = vlaneseq  ;;  %vm373_vm0 = vcmask 130048  }
   0xe   : > { %2198 = vset.pattern.permute.xlu0 %v2336_v1  ;;  %2199 = vset.pattern.permute.xlu1 %v2336_v1  ;;  %s1983_s27 = sshll.u32 %s3333_s25, 3  ;;  %v577_v21 = vld [vmem:[%s3327_s2 + $0x50] sm:$0xff]  ;;  %v576_v22 = vld [vmem:[%s3327_s2 + $0x48] sm:$0xff]  ;;  %v2431_v23 = vld [vmem:[%s3327_s2 + $0x40] sm:$0xff]  ;;  %v2337_v35 = vmov 0.0  }
   0xf   : > { %2085 = vmatprep.subr.mxu0 %v372_v2  ;;  %s2398_s30 = scalar_lea.vmem %s3325_s0, %s1983_s27  ;;  %2161 = vmatprep.subr.mxu1 %v578_v20  ;;  %v2437_v24 = vld [vmem:[%s3327_s2 + $0x38] sm:$0xff]  ;;  %v2444_v25 = vld [vmem:[%s3327_s2 + $0x30] sm:$0xff]  ;;  %v2451_v26 = vld [vmem:[%s3327_s2 + $0x28] sm:$0xff]  ;;  %v2484_v32 = vand.u32 127, %v273_v31  ;;  %s3258_s20 = scalar_lea.vmem %s3331_s6, %s1983_s27 }
  0x10   : > { %2086 = vmatpush3.msra.mxu0 %v372_v2  ;;  %v257_v3 = vld [vmem:[%s2398_s30] sm:$0xff]  ;;  %v259_v4 = vld [vmem:[%s2398_s30 + $0x10] sm:$0xff]  ;;  %v258_v5 = vld [vmem:[%s2398_s30 + $0x8] sm:$0xff]  ;;  %2173 = vmatpush3.msra.mxu1 %v578_v20 }
  0x11   : > { %276 = vperm.xlu0 %2198, %v257_v3   ;;  %282 = vperm.xlu1 %2199, %v259_v4   ;;  %v260_v6 = vld [vmem:[%s2398_s30 + $0x18] sm:$0xff]  ;;  %v261_v8 = vld [vmem:[%s2398_s30 + $0x20] sm:$0xff]  ;;  %v262_v9 = vld [vmem:[%s2398_s30 + $0x28] sm:$0xff] }
  0x12   : > { %2087 = vmatprep.subr.mxu0 %v371_v7  ;;  %v263_v10 = vld [vmem:[%s2398_s30 + $0x30] sm:$0xff]  ;;  %v264_v11 = vld [vmem:[%s2398_s30 + $0x38] sm:$0xff]  ;;  %v265_v12 = vld [vmem:[%s2398_s30 + $0x40] sm:$0xff]  ;;  %2162 = vmatprep.subr.mxu1 %v577_v21 }
  0x13   : > { %2088 = vmatpush3.msra.mxu0 %v371_v7  ;;  %v266_v13 = vld [vmem:[%s2398_s30 + $0x48] sm:$0xff]  ;;  %v267_v14 = vld [vmem:[%s2398_s30 + $0x50] sm:$0xff]  ;;  %v268_v15 = vld [vmem:[%s2398_s30 + $0x58] sm:$0xff]  ;;  %2174 = vmatpush3.msra.mxu1 %v577_v21 }
  0x14   : > { %v269_v16 = vld [vmem:[%s2398_s30 + $0x60] sm:$0xff]  ;;  %v270_v17 = vld [vmem:[%s2398_s30 + $0x68] sm:$0xff]  ;;  %v271_v18 = vld [vmem:[%s2398_s30 + $0x70] sm:$0xff]  ;;  %2113 = vmatprep.subr.mxu0 %v578_v20  ;;  %2163 = vmatprep.subr.mxu1 %v576_v22 }
  0x15   : > { %279 = vperm.xlu0 %2198, %v258_v5   ;;  %285 = vperm.xlu1 %2199, %v260_v6   ;;  %v272_v19 = vld [vmem:[%s2398_s30 + $0x78] sm:$0xff]  ;;  %v2458_v27 = vld [vmem:[%s3327_s2 + $0x20] sm:$0xff]  ;;  %v2472_v29 = vld [vmem:[%s3327_s2 + $0x10] sm:$0xff] }
  0x16   : > { %2175 = vmatpush3.msra.mxu1 %v576_v22  ;;  %v2465_v28 = vld [vmem:[%s3327_s2 + $0x18] sm:$0xff]  ;;  %v2479_v30 = vld [vmem:[%s3327_s2 + $0x8] sm:$0xff]  ;;  %v567_v2 = vld [vmem:[%s3327_s2] sm:$0xff] }
  0x17   : > { %2164 = vmatprep.subr.mxu1 %v2431_v23  ;;  %v2556_v3 = vld [vmem:[%s3329_s4] ss:$0 sm:$0xff] }
  0x18   : > { %2176 = vmatpush3.msra.mxu1 %v2431_v23 }
  0x19   : > { %288 = vperm.xlu0 %2198, %v261_v8   ;;  %291 = vperm.xlu1 %2199, %v262_v9  }
  0x1a   : > { %2165 = vmatprep.subr.mxu1 %v2437_v24 }
  0x1b   : > { %2177 = vmatpush3.msra.mxu1 %v2437_v24 }
  0x1c   : > { %2166 = vmatprep.subr.mxu1 %v2444_v25 }
  0x1d   : > { %294 = vperm.xlu0 %2198, %v263_v10   ;;  %297 = vperm.xlu1 %2199, %v264_v11  }
  0x1e   : > { %2178 = vmatpush3.msra.mxu1 %v2444_v25 }
  0x1f   : > { %2167 = vmatprep.subr.mxu1 %v2451_v26 }
  0x20   : > { %2179 = vmatpush3.msra.mxu1 %v2451_v26 }
  0x21   : > { %300 = vperm.xlu0 %2198, %v265_v12   ;;  %303 = vperm.xlu1 %2199, %v266_v13  }
  0x22   : > { %2168 = vmatprep.subr.mxu1 %v2458_v27 }
  0x23   : > { %2180 = vmatpush3.msra.mxu1 %v2458_v27 }
  0x24   : > { %2169 = vmatprep.subr.mxu1 %v2465_v28 }
  0x25   : > { %306 = vperm.xlu0 %2198, %v267_v14   ;;  %309 = vperm.xlu1 %2199, %v268_v15  }
  0x26   : > { %2181 = vmatpush3.msra.mxu1 %v2465_v28 }
  0x27   : > { %2170 = vmatprep.subr.mxu1 %v2472_v29 }
  0x28   : > { %2182 = vmatpush3.msra.mxu1 %v2472_v29 }
  0x29   : > { %312 = vperm.xlu0 %2198, %v269_v16   ;;  %315 = vperm.xlu1 %2199, %v270_v17  }
  0x2a   : > { %2171 = vmatprep.subr.mxu1 %v2479_v30 }
  0x2b   : > { %2183 = vmatpush3.msra.mxu1 %v2479_v30 }
  0x2c   : > { %2172 = vmatprep.subr.mxu1 %v567_v2 }
  0x2d   : > { %318 = vperm.xlu0 %2198, %v271_v18   ;;  %321 = vperm.xlu1 %2199, %v272_v19  }
  0x2e   : > { %2184 = vmatpush3.msra.mxu1 %v567_v2 }
  0x31   : > { %875 = vrot.lane.b32.xlu1 %v2556_v3, %s2338_s13  ;;  %1022 = vrot.lane.b32.xlu0 %v2556_v3, %s2339_s14 }
  0x8c   : > { %v277_v33 = vpop.permute.xlu0 %276  ;;  %v283_v34 = vpop.permute.xlu1 %282 }
  0x8d   : > { %vm323_vm1 = vcmp.eq.s32.totalorder %v277_v33, %v2484_v32  ;;  %vm325_vm2 = vcmp.eq.s32.totalorder %v283_v34, %v2484_v32 }
  0x8e   : > { %v1986_v36 = vsel %vm323_vm1, 1.0, %v2337_v35  ;;  %v1988_v39 = vsel %vm325_vm2, 1.0, %v2337_v35  ;;  %vm804_vm2 = vcmask 261120  }
  0x8f   : > { %2089 = vmatprep.mubr.msk.f32.mxu0 %vm373_vm0, %v1986_v36 }
  0x90   : > { %v280_v37 = vpop.permute.xlu0 %279  ;;  %v286_v38 = vpop.permute.xlu1 %285 }
  0x91   : > { %vm324_vm3 = vcmp.eq.s32.totalorder %v280_v37, %v2484_v32  ;;  %vm326_vm4 = vcmp.eq.s32.totalorder %v286_v38, %v2484_v32 }
  0x92   : > { %v1987_v40 = vsel %vm324_vm3, 1.0, %v2337_v35  ;;  %v1989_v41 = vsel %vm326_vm4, 1.0, %v2337_v35 }
  0x93   : > { %2090 = vmatmul.mubr.msk.f32.vlgmr.msra.gmra.mxu0 %vm373_vm0, %v1987_v40 }
  0x94   : > { %v289_v42 = vpop.permute.xlu0 %288  ;;  %2092 = vmatprep.mubr.msk.f32.mxu0 %vm373_vm0, %v1988_v39  ;;  %v292_v43 = vpop.permute.xlu1 %291  ;;  %2114 = vmatpush3.msra.mxu0 %v578_v20  ;;  %v2580_v20 = vld [vmem:[%s3328_s3] ss:$0 sm:$0xff] }
  0x95   : > { %vm327_vm5 = vcmp.eq.s32.totalorder %v289_v42, %v2484_v32  ;;  %vm328_vm6 = vcmp.eq.s32.totalorder %v292_v43, %v2484_v32  ;;  %2115 = vmatprep.subr.mxu0 %v577_v21 }
  0x96   : > { %v1990_v44 = vsel %vm327_vm5, 1.0, %v2337_v35  ;;  %2116 = vmatpush3.msra.mxu0 %v577_v21  ;;  %v1991_v45 = vsel %vm328_vm6, 1.0, %v2337_v35 }
  0x97   : > { %2093 = vmatmul.mubr.msk.f32.gmra.mxu0 %vm373_vm0, %v1989_v41  ;;  %2117 = vmatprep.subr.mxu0 %v576_v22 }
  0x98   : > { %2095 = vmatprep.mubr.msk.f32.mxu0 %vm373_vm0, %v1990_v44  ;;  %v295_v46 = vpop.permute.xlu0 %294  ;;  %v298_v47 = vpop.permute.xlu1 %297  ;;  %2118 = vmatpush3.msra.mxu0 %v576_v22 }
  0x99   : > { %vm329_vm7 = vcmp.eq.s32.totalorder %v295_v46, %v2484_v32  ;;  %vm330_vm8 = vcmp.eq.s32.totalorder %v298_v47, %v2484_v32  ;;  %2119 = vmatprep.subr.mxu0 %v2431_v23 }
  0x9a   : > { %v1992_v48 = vsel %vm329_vm7, 1.0, %v2337_v35  ;;  %2120 = vmatpush3.msra.mxu0 %v2431_v23  ;;  %v1993_v49 = vsel %vm330_vm8, 1.0, %v2337_v35 }
  0x9b   : > { %2096 = vmatmul.mubr.msk.f32.gmra.mxu0 %vm373_vm0, %v1991_v45  ;;  %2121 = vmatprep.subr.mxu0 %v2437_v24 }
  0x9c   : > { %2098 = vmatprep.mubr.msk.f32.mxu0 %vm373_vm0, %v1992_v48  ;;  %v301_v50 = vpop.permute.xlu0 %300  ;;  %v304_v51 = vpop.permute.xlu1 %303  ;;  %2122 = vmatpush3.msra.mxu0 %v2437_v24 }
  0x9d   : > { %vm331_vm9 = vcmp.eq.s32.totalorder %v301_v50, %v2484_v32  ;;  %vm332_vm10 = vcmp.eq.s32.totalorder %v304_v51, %v2484_v32  ;;  %2123 = vmatprep.subr.mxu0 %v2444_v25 }
  0x9e   : > { %v1994_v52 = vsel %vm331_vm9, 1.0, %v2337_v35  ;;  %2124 = vmatpush3.msra.mxu0 %v2444_v25  ;;  %v1995_v53 = vsel %vm332_vm10, 1.0, %v2337_v35 }
  0x9f   : > { %2099 = vmatmul.mubr.msk.f32.gmra.mxu0 %vm373_vm0, %v1993_v49  ;;  %2125 = vmatprep.subr.mxu0 %v2451_v26 }
  0xa0   : > { %2101 = vmatprep.mubr.msk.f32.mxu0 %vm373_vm0, %v1994_v52  ;;  %v307_v54 = vpop.permute.xlu0 %306  ;;  %v310_v55 = vpop.permute.xlu1 %309  ;;  %2126 = vmatpush3.msra.mxu0 %v2451_v26 }
  0xa1   : > { %vm333_vm11 = vcmp.eq.s32.totalorder %v307_v54, %v2484_v32  ;;  %vm334_vm12 = vcmp.eq.s32.totalorder %v310_v55, %v2484_v32  ;;  %2127 = vmatprep.subr.mxu0 %v2458_v27 }
  0xa2   : > { %v1996_v56 = vsel %vm333_vm11, 1.0, %v2337_v35  ;;  %2128 = vmatpush3.msra.mxu0 %v2458_v27  ;;  %v1997_v57 = vsel %vm334_vm12, 1.0, %v2337_v35 }
  0xa3   : > { %2102 = vmatmul.mubr.msk.f32.gmra.mxu0 %vm373_vm0, %v1995_v53  ;;  %2129 = vmatprep.subr.mxu0 %v2465_v28 }
  0xa4   : > { %2104 = vmatprep.mubr.msk.f32.mxu0 %vm373_vm0, %v1996_v56  ;;  %v313_v58 = vpop.permute.xlu0 %312  ;;  %v316_v59 = vpop.permute.xlu1 %315  ;;  %2130 = vmatpush3.msra.mxu0 %v2465_v28 }
  0xa5   : > { %vm335_vm13 = vcmp.eq.s32.totalorder %v313_v58, %v2484_v32  ;;  %vm336_vm14 = vcmp.eq.s32.totalorder %v316_v59, %v2484_v32  ;;  %2131 = vmatprep.subr.mxu0 %v2472_v29 }
  0xa6   : > { %v1998_v60 = vsel %vm335_vm13, 1.0, %v2337_v35  ;;  %2132 = vmatpush3.msra.mxu0 %v2472_v29  ;;  %v1999_v61 = vsel %vm336_vm14, 1.0, %v2337_v35 }
  0xa7   : > { %2105 = vmatmul.mubr.msk.f32.gmra.mxu0 %vm373_vm0, %v1997_v57  ;;  %2133 = vmatprep.subr.mxu0 %v2479_v30 }
  0xa8   : > { %2107 = vmatprep.mubr.msk.f32.mxu0 %vm373_vm0, %v1998_v60  ;;  %v319_v62 = vpop.permute.xlu0 %318  ;;  %v322_v63 = vpop.permute.xlu1 %321  ;;  %2134 = vmatpush3.msra.mxu0 %v2479_v30 }
  0xa9   : > { %vm337_vm15 = vcmp.eq.s32.totalorder %v319_v62, %v2484_v32  ;;  %vm338_vm1 = vcmp.eq.s32.totalorder %v322_v63, %v2484_v32  ;;  %2135 = vmatprep.subr.mxu0 %v567_v2 }
  0xaa   : > { %v2000_v0 = vsel %vm337_vm15, 1.0, %v2337_v35  ;;  %v2001_v1 = vsel %vm338_vm1, 1.0, %v2337_v35  ;;  %2136 = vmatpush3.msra.mxu0 %v567_v2 }
  0xab   : > { %2108 = vmatmul.mubr.msk.f32.gmra.mxu0 %vm373_vm0, %v1999_v61 }
  0xac   : > { %2110 = vmatprep.mubr.msk.f32.mxu0 %vm373_vm0, %v2000_v0  ;;  %v2582_v22 = vpop.permute.xlu1 %875  ;;  %v2592_v27 = vpop.permute.xlu0 %1022 }
  0xaf   : > { %2111 = vmatmul.mubr.msk.f32.gmra.mxu0 %vm373_vm0, %v2001_v1  ;;  %vm586_vm0 = vcmask 785408  }
 0x153   : > { %v2091_v4 = vpop.f32.mrf.mxu0 }
 0x155   : > { %v488_v5 = vpop.f32.mrf.mxu0 }
 0x156   : > { %2137 = vmatprep.mubr.msk.f32.mxu0 %vm586_vm0, %v488_v5 }
 0x157   : > { %v2094_v6 = vpop.f32.mrf.mxu0  ;;  %2138 = vmatmul.mubr.msk.f32.vlgmr.msra.gmra.mxu0 %vm586_vm0, %v2091_v4 }
 0x159   : > { %v498_v7 = vpop.f32.mrf.mxu0 }
 0x15a   : > { %2140 = vmatprep.mubr.msk.f32.mxu0 %vm586_vm0, %v498_v7 }
 0x15b   : > { %v2097_v8 = vpop.f32.mrf.mxu0  ;;  %2141 = vmatmul.mubr.msk.f32.gmra.mxu0 %vm586_vm0, %v2094_v6 }
 0x15d   : > { %v508_v9 = vpop.f32.mrf.mxu0 }
 0x15e   : > { %2143 = vmatprep.mubr.msk.f32.mxu1 %vm586_vm0, %v508_v9 }
 0x15f   : > { %v2100_v10 = vpop.f32.mrf.mxu0  ;;  %2144 = vmatmul.mubr.msk.f32.vlgmr.msra.gmra.mxu1 %vm586_vm0, %v2097_v8 }
 0x161   : > { %v518_v11 = vpop.f32.mrf.mxu0 }
 0x162   : > { %2146 = vmatprep.mubr.msk.f32.mxu1 %vm586_vm0, %v518_v11 }
 0x163   : > { %v2103_v12 = vpop.f32.mrf.mxu0  ;;  %2147 = vmatmul.mubr.msk.f32.gmra.mxu1 %vm586_vm0, %v2100_v10 }
 0x165   : > { %v528_v13 = vpop.f32.mrf.mxu0 }
 0x166   : > { %2149 = vmatprep.mubr.msk.f32.mxu1 %vm586_vm0, %v528_v13 }
 0x167   : > { %v2106_v14 = vpop.f32.mrf.mxu0  ;;  %2150 = vmatmul.mubr.msk.f32.gmra.mxu1 %vm586_vm0, %v2103_v12 }
 0x169   : > { %v538_v15 = vpop.f32.mrf.mxu0 }
 0x16a   : > { %2152 = vmatprep.mubr.msk.f32.mxu1 %vm586_vm0, %v538_v15 }
 0x16b   : > { %v2109_v16 = vpop.f32.mrf.mxu0  ;;  %2153 = vmatmul.mubr.msk.f32.gmra.mxu1 %vm586_vm0, %v2106_v14 }
 0x16d   : > { %v548_v17 = vpop.f32.mrf.mxu0 }
 0x16e   : > { %2155 = vmatprep.mubr.msk.f32.mxu1 %vm586_vm0, %v548_v17 }
 0x16f   : > { %v2112_v18 = vpop.f32.mrf.mxu0  ;;  %2156 = vmatmul.mubr.msk.f32.gmra.mxu1 %vm586_vm0, %v2109_v16 }
 0x171   : > { %v558_v19 = vpop.f32.mrf.mxu0 }
 0x172   : > { %2158 = vmatprep.mubr.msk.f32.mxu1 %vm586_vm0, %v558_v19 }
 0x173   : > { %2159 = vmatmul.mubr.msk.f32.gmra.mxu1 %vm586_vm0, %v2112_v18 }
 0x217   : > { %v2139_v21 = vpop.f32.mrf.mxu0 }
 0x218   : > { %v2585_v23 = vadd.f32 %v2139_v21, %v2580_v20 }
 0x219   : > { %v701_v24 = vpop.f32.mrf.mxu0 }
 0x21a   : > { %v2588_v25 = vadd.f32 %v2580_v20, %v701_v24  ;;  %v879_v26 = vmul.f32 %v2582_v22, %v2585_v23  ;;  %v1026_v29 = vmul.f32 %v2592_v27, %v2585_v23  ;;  %v789_v32 = vmul.f32 %v2556_v3, %v2585_v23 }
 0x21b   : > { %v2142_v34 = vpop.f32.mrf.mxu0 }
 0x21c   : > { %912 = vrot.lane.b32.xlu1 %v879_v26, %s2340_s17  ;;  %v878_v28 = vmul.f32 %v2582_v22, %v2588_v25  ;;  %v788_v30 = vmul.f32 %v2556_v3, %v2588_v25  ;;  %v808_v33 = vsel %vm804_vm2, %v789_v32, 0.0  ;;  %v2608_v35 = vadd.f32 %v2142_v34, %v2580_v20 }
 0x21d   : > { %v1025_v37 = vmul.f32 %v2592_v27, %v2588_v25  ;;  %v711_v38 = vpop.f32.mrf.mxu0 }
 0x21e   : > { %910 = vrot.lane.b32.xlu0 %v878_v28, %s2340_s17  ;;  %v805_v31 = vsel %vm804_vm2, %v788_v30, 0.0  ;;  %v881_v36 = vmul.f32 %v2582_v22, %v2608_v35  ;;  %v2617_v39 = vadd.f32 %v2580_v20, %v711_v38  ;;  %v1028_v40 = vmul.f32 %v2592_v27, %v2608_v35 }
 0x21f   : > { %v2145_v41 = vpop.f32.mrf.mxu1  ;;  %v791_v48 = vmul.f32 %v2556_v3, %v2608_v35 }
 0x220   : > { %1059 = vrot.lane.b32.xlu1 %v1026_v29, %s2339_s14  ;;  %v880_v42 = vmul.f32 %v2582_v22, %v2617_v39  ;;  %v2625_v44 = vadd.f32 %v2145_v41, %v2580_v20  ;;  %v1027_v51 = vmul.f32 %v2592_v27, %v2617_v39  ;;  %v790_v59 = vmul.f32 %v2556_v3, %v2617_v39 }
 0x221   : > { %v721_v43 = vpop.f32.mrf.mxu1  ;;  %v814_v49 = vsel %vm804_vm2, %v791_v48, 0.0 }
 0x222   : > { %v2629_v45 = vadd.f32 %v2580_v20, %v721_v43  ;;  %v1030_v46 = vmul.f32 %v2592_v27, %v2625_v44  ;;  %v811_v60 = vsel %vm804_vm2, %v790_v59, 0.0  ;;  %v883_v61 = vmul.f32 %v2582_v22, %v2625_v44 }
 0x223   : > { %v2148_v53 = vpop.f32.mrf.mxu1  ;;  %v793_v7 = vmul.f32 %v2556_v3, %v2625_v44 }
 0x224   : > { %v882_v47 = vmul.f32 %v2582_v22, %v2629_v45  ;;  %v792_v50 = vmul.f32 %v2556_v3, %v2629_v45  ;;  %v2647_v55 = vadd.f32 %v2148_v53, %v2580_v20  ;;  %v1029_v9 = vmul.f32 %v2592_v27, %v2629_v45 }
 0x225   : > { %v731_v54 = vpop.f32.mrf.mxu1  ;;  %v820_v8 = vsel %vm804_vm2, %v793_v7, 0.0 }
 0x226   : > { %v817_v52 = vsel %vm804_vm2, %v792_v50, 0.0  ;;  %v2650_v56 = vadd.f32 %v2580_v20, %v731_v54  ;;  %v1032_v57 = vmul.f32 %v2592_v27, %v2647_v55  ;;  %v885_v10 = vmul.f32 %v2582_v22, %v2647_v55 }
 0x227   : > { %v2151_v0 = vpop.f32.mrf.mxu1  ;;  %v795_v19 = vmul.f32 %v2556_v3, %v2647_v55 }
 0x228   : > { %v884_v58 = vmul.f32 %v2582_v22, %v2650_v56  ;;  %v794_v62 = vmul.f32 %v2556_v3, %v2650_v56  ;;  %v2668_v2 = vadd.f32 %v2151_v0, %v2580_v20  ;;  %v1031_v24 = vmul.f32 %v2592_v27, %v2650_v56 }
 0x229   : > { %v741_v1 = vpop.f32.mrf.mxu1  ;;  %v826_v21 = vsel %vm804_vm2, %v795_v19, 0.0 }
 0x22a   : > { %v823_v63 = vsel %vm804_vm2, %v794_v62, 0.0  ;;  %v2671_v4 = vadd.f32 %v2580_v20, %v741_v1  ;;  %v1034_v5 = vmul.f32 %v2592_v27, %v2668_v2  ;;  %v887_v26 = vmul.f32 %v2582_v22, %v2668_v2 }
 0x22b   : > { %v2154_v13 = vpop.f32.mrf.mxu1 }
 0x22c   : > { %v886_v6 = vmul.f32 %v2582_v22, %v2671_v4  ;;  %v796_v11 = vmul.f32 %v2556_v3, %v2671_v4  ;;  %v2692_v15 = vadd.f32 %v2154_v13, %v2580_v20 }
 0x22d   : > { %v751_v14 = vpop.f32.mrf.mxu1 }
 0x22e   : > { %v829_v12 = vsel %vm804_vm2, %v796_v11, 0.0  ;;  %v2695_v16 = vadd.f32 %v2580_v20, %v751_v14  ;;  %v1036_v17 = vmul.f32 %v2592_v27, %v2692_v15  ;;  %v889_v41 = vmul.f32 %v2582_v22, %v2692_v15 }
 0x22f   : > { %v2157_v30 = vpop.f32.mrf.mxu1 }
 0x230   : > { %v888_v18 = vmul.f32 %v2582_v22, %v2695_v16  ;;  %v798_v28 = vmul.f32 %v2556_v3, %v2695_v16  ;;  %v2716_v32 = vadd.f32 %v2157_v30, %v2580_v20 }
 0x232   : > { %v835_v29 = vsel %vm804_vm2, %v798_v28, 0.0  ;;  %v1038_v34 = vmul.f32 %v2592_v27, %v2716_v32  ;;  %v891_v62 = vmul.f32 %v2582_v22, %v2716_v32 }
 0x23d   : > { %806 = vadd.xlane.f32.xlu0 %v805_v31  ;;  %v761_v31 = vpop.f32.mrf.mxu1 }
 0x244   : > { %809 = vadd.xlane.f32.xlu1 %v808_v33  ;;  %v2719_v33 = vadd.f32 %v2580_v20, %v761_v31 }
 0x246   : > { %v1037_v30 = vmul.f32 %v2592_v27, %v2719_v33 }
 0x253   : > { %916 = vrot.lane.b32.xlu0 %v881_v36, %s2340_s17  ;;  %v890_v36 = vmul.f32 %v2582_v22, %v2719_v33 }
 0x255   : > { %1057 = vrot.lane.b32.xlu1 %v1025_v37, %s2339_s14  ;;  %v797_v37 = vmul.f32 %v2556_v3, %v2668_v2 }
 0x257   : > { %v832_v38 = vsel %vm804_vm2, %v797_v37, 0.0 }
 0x259   : > { %1063 = vrot.lane.b32.xlu1 %v1028_v40, %s2339_s14  ;;  %v1033_v40 = vmul.f32 %v2592_v27, %v2671_v4 }
 0x25d   : > { %914 = vrot.lane.b32.xlu1 %v880_v42, %s2340_s17  ;;  %v800_v42 = vmul.f32 %v2556_v3, %v2719_v33 }
 0x25f   : > { %v841_v43 = vsel %vm804_vm2, %v800_v42, 0.0 }
 0x261   : > { %1067 = vrot.lane.b32.xlu1 %v1030_v46, %s2339_s14  ;;  %v2160_v46 = vpop.f32.mrf.mxu1 }
 0x262   : > { %v2740_v48 = vadd.f32 %v2160_v46, %v2580_v20 }
 0x264   : > { %v1040_v50 = vmul.f32 %v2592_v27, %v2740_v48 }
 0x265   : > { %918 = vrot.lane.b32.xlu1 %v882_v47, %s2340_s17  ;;  %v771_v47 = vpop.f32.mrf.mxu1 }
 0x272   : > { %815 = vadd.xlane.f32.xlu0 %v814_v49  ;;  %v2743_v49 = vadd.f32 %v2580_v20, %v771_v47 }
 0x274   : > { %v802_v0 = vmul.f32 %v2556_v3, %v2743_v49  ;;  %v1039_v47 = vmul.f32 %v2592_v27, %v2743_v49 }
 0x288   : > { %1061 = vrot.lane.b32.xlu0 %v1027_v51, %s2339_s14  ;;  %v892_v51 = vmul.f32 %v2582_v22, %v2743_v49 }
 0x289   : > { %818 = vadd.xlane.f32.xlu1 %v817_v52  ;;  %v799_v52 = vmul.f32 %v2556_v3, %v2692_v15 }
 0x28b   : > { %v838_v54 = vsel %vm804_vm2, %v799_v52, 0.0 }
 0x290   : > { %v911_v53 = vpop.permute.xlu0 %910 }
 0x29a   : > { %1071 = vrot.lane.b32.xlu1 %v1032_v57, %s2339_s14 }
 0x29e   : > { %922 = vrot.lane.b32.xlu1 %v884_v58, %s2340_s17 }
 0x2a7   : > { %812 = vadd.xlane.f32.xlu0 %v811_v60  ;;  %v1035_v60 = vmul.f32 %v2592_v27, %v2695_v16 }
 0x2bd   : > { %920 = vrot.lane.b32.xlu0 %v883_v61, %s2340_s17 }
 0x2c2   : > { %824 = vadd.xlane.f32.xlu1 %v823_v63  ;;  %v2767_v63 = vpop.permute.xlu1 %912 }
 0x2c3   : > { %v961_v27 = vsel %vm804_vm2, %v2767_v63, 0.0 }
 0x2c6   : > { %v2754_v57 = vpop.xlane.xlu0 %806 }
 0x2ca   : > { %v917_v20 = vpop.permute.xlu0 %916 }
 0x2cb   : > { %v967_v11 = vsel %vm804_vm2, %v917_v20, 0.0 }
 0x2d3   : > { %1075 = vrot.lane.b32.xlu1 %v1034_v5, %s2339_s14  ;;  %v847_v5 = vsel %vm804_vm2, %v802_v0, 0.0 }
 0x2d7   : > { %926 = vrot.lane.b32.xlu1 %v886_v6, %s2340_s17  ;;  %v1060_v6 = vpop.permute.xlu1 %1059 }
 0x2dc   : > { %821 = vadd.xlane.f32.xlu0 %v820_v8  ;;  %v1108_v8 = vsel %vm804_vm2, %v1060_v6, 0.0 }
 0x2f2   : > { %1065 = vrot.lane.b32.xlu0 %v1029_v9, %s2339_s14 }
 0x2f6   : > { %924 = vrot.lane.b32.xlu0 %v885_v10, %s2340_s17  ;;  %v958_v10 = vsel %vm804_vm2, %v911_v53, 0.0 }
 0x2fb   : > { %830 = vadd.xlane.f32.xlu1 %v829_v12  ;;  %v2756_v58 = vpop.xlane.xlu0 %815 }
 0x2ff   : > { %v2758_v59 = vpop.permute.xlu0 %1061 }
 0x30c   : > { %1079 = vrot.lane.b32.xlu1 %v1036_v17, %s2339_s14 }
 0x310   : > { %930 = vrot.lane.b32.xlu1 %v888_v18, %s2340_s17  ;;  %v801_v18 = vmul.f32 %v2556_v3, %v2716_v32 }
 0x315   : > { %827 = vadd.xlane.f32.xlu0 %v826_v21 }
 0x32b   : > { %1069 = vrot.lane.b32.xlu0 %v1031_v24, %s2339_s14  ;;  %v844_v24 = vsel %vm804_vm2, %v801_v18, 0.0 }
 0x32f   : > { %928 = vrot.lane.b32.xlu0 %v887_v26, %s2340_s17 }
 0x330   : > { %v2762_v61 = vpop.xlane.xlu0 %812 }
 0x334   : > { %836 = vadd.xlane.f32.xlu1 %v835_v29  ;;  %v921_v1 = vpop.permute.xlu0 %920 }
 0x335   : > { %v973_v13 = vsel %vm804_vm2, %v921_v1, 0.0 }
 0x345   : > { %1083 = vrot.lane.b32.xlu1 %v1038_v34, %s2339_s14  ;;  %v893_v34 = vmul.f32 %v2582_v22, %v2740_v48 }
 0x349   : > { %934 = vrot.lane.b32.xlu1 %v890_v36, %s2340_s17 }
 0x34e   : > { %833 = vadd.xlane.f32.xlu0 %v832_v38 }
 0x364   : > { %1073 = vrot.lane.b32.xlu0 %v1033_v40, %s2339_s14 }
 0x365   : > { %v2773_v7 = vpop.xlane.xlu0 %821 }
 0x368   : > { %932 = vrot.lane.b32.xlu0 %v889_v41, %s2340_s17  ;;  %v803_v41 = vmul.f32 %v2556_v3, %v2740_v48 }
 0x369   : > { %v1066_v9 = vpop.permute.xlu0 %1065 }
 0x36a   : > { %v1117_v17 = vsel %vm804_vm2, %v1066_v9, 0.0  ;;  %v850_v42 = vsel %vm804_vm2, %v803_v41, 0.0 }
 0x36d   : > { %842 = vadd.xlane.f32.xlu1 %v841_v43  ;;  %v925_v12 = vpop.permute.xlu0 %924  ;;  %v2801_v43 = vpop.xlane.xlu1 %809 }
 0x36e   : > { %v979_v21 = vsel %vm804_vm2, %v925_v12, 0.0  ;;  %v1111_v12 = vsel %vm804_vm2, %v2758_v59, 0.0 }
 0x371   : > { %v1058_v46 = vpop.permute.xlu1 %1057 }
 0x372   : > { %v1105_v6 = vsel %vm804_vm2, %v1058_v46, 0.0 }
 0x375   : > { %v1064_v22 = vpop.permute.xlu1 %1063 }
 0x376   : > { %v1114_v9 = vsel %vm804_vm2, %v1064_v22, 0.0 }
 0x37e   : > { %1087 = vrot.lane.b32.xlu1 %v1040_v50, %s2339_s14  ;;  %v915_v50 = vpop.permute.xlu1 %914 }
 0x382   : > { %938 = vrot.lane.b32.xlu1 %v892_v51, %s2340_s17  ;;  %v1068_v52 = vpop.permute.xlu1 %1067 }
 0x383   : > { %v1120_v63 = vsel %vm804_vm2, %v1068_v52, 0.0 }
 0x387   : > { %839 = vadd.xlane.f32.xlu0 %v838_v54 }
 0x39d   : > { %1077 = vrot.lane.b32.xlu0 %v1035_v60, %s2339_s14  ;;  %v919_v60 = vpop.permute.xlu1 %918 }
 0x39e   : > { %v2779_v14 = vpop.xlane.xlu0 %827  ;;  %v970_v18 = vsel %vm804_vm2, %v919_v60, 0.0 }
 0x3a1   : > { %936 = vrot.lane.b32.xlu0 %v891_v62, %s2340_s17  ;;  %v2810_v62 = vpop.xlane.xlu1 %818 }
 0x3a2   : > { %v1070_v19 = vpop.permute.xlu0 %1069 }
 0x3a3   : > { %v1123_v26 = vsel %vm804_vm2, %v1070_v19, 0.0 }
 0x3a5   : > { %v1072_v0 = vpop.permute.xlu1 %1071 }
 0x3a6   : > { %848 = vadd.xlane.f32.xlu1 %v847_v5  ;;  %v929_v28 = vpop.permute.xlu0 %928 }
 0x3a7   : > { %v985_v29 = vsel %vm804_vm2, %v929_v28, 0.0 }
 0x3a9   : > { %v923_v1 = vpop.permute.xlu1 %922 }
 0x3aa   : > { %1109 = vadd.xlane.f32.xlu1 %v1108_v8  ;;  %v976_v28 = vsel %vm804_vm2, %v923_v1, 0.0 }
 0x3ad   : > { %v2814_v5 = vpop.xlane.xlu1 %824 }
 0x3ae   : > { %959 = vadd.xlane.f32.xlu1 %v958_v10  ;;  %v964_v10 = vsel %vm804_vm2, %v915_v50, 0.0 }
 0x3b1   : > { %v1076_v8 = vpop.permute.xlu1 %1075 }
 0x3b2   : > { %968 = vadd.xlane.f32.xlu1 %v967_v11 }
 0x3b5   : > { %v927_v11 = vpop.permute.xlu1 %926 }
 0x3b6   : > { %974 = vadd.xlane.f32.xlu1 %v973_v13 }
 0x3b9   : > { %v2821_v13 = vpop.xlane.xlu1 %830 }
 0x3ba   : > { %1118 = vadd.xlane.f32.xlu1 %v1117_v17 }
 0x3bd   : > { %v1080_v17 = vpop.permute.xlu1 %1079 }
 0x3be   : > { %980 = vadd.xlane.f32.xlu1 %v979_v21  ;;  %v1126_v21 = vsel %vm804_vm2, %v1072_v0, 0.0 }
 0x3c0   : > { %845 = vadd.xlane.f32.xlu0 %v844_v24 }
 0x3c1   : > { %v931_v24 = vpop.permute.xlu1 %930 }
 0x3c2   : > { %1124 = vadd.xlane.f32.xlu1 %v1123_v26 }
 0x3c5   : > { %v2829_v59 = vpop.xlane.xlu1 %836 }
 0x3c6   : > { %986 = vadd.xlane.f32.xlu1 %v985_v29 }
 0x3d6   : > { %1081 = vrot.lane.b32.xlu0 %v1037_v30, %s2339_s14 }
 0x3d7   : > { %v2791_v31 = vpop.xlane.xlu0 %833 }
 0x3da   : > { %940 = vrot.lane.b32.xlu0 %v893_v34, %s2340_s17  ;;  %v1132_v34 = vsel %vm804_vm2, %v1076_v8, 0.0  ;;  %v2848_v8 = vld [vmem:[#allocation2] ss:$0 sm:$0xff] }
 0x3db   : > { %v1074_v36 = vpop.permute.xlu0 %1073 }
 0x3dc   : > { %v1129_v37 = vsel %vm804_vm2, %v1074_v36, 0.0 }
 0x3dd   : > { %1130 = vadd.xlane.f32.xlu1 %v1129_v37  ;;  %v1084_v37 = vpop.permute.xlu1 %1083 }
 0x3de   : > { %v1144_v22 = vsel %vm804_vm2, %v1084_v37, 0.0 }
 0x3df   : > { %v933_v38 = vpop.permute.xlu0 %932 }
 0x3e0   : > { %v991_v40 = vsel %vm804_vm2, %v933_v38, 0.0  ;;  %v982_v38 = vsel %vm804_vm2, %v927_v11, 0.0 }
 0x3e1   : > { %992 = vadd.xlane.f32.xlu1 %v991_v40  ;;  %v1138_v40 = vsel %vm804_vm2, %v1080_v17, 0.0  ;;  %v935_v41 = vpop.permute.xlu1 %934 }
 0x3e2   : > { %v994_v50 = vsel %vm804_vm2, %v935_v41, 0.0 }
 0x3f6   : > { %v2837_v46 = vpop.xlane.xlu1 %842 }
 0x3f9   : > { %851 = vadd.xlane.f32.xlu0 %v850_v42  ;;  %v988_v42 = vsel %vm804_vm2, %v931_v24, 0.0 }
 0x40f   : > { %1085 = vrot.lane.b32.xlu0 %v1039_v47, %s2339_s14  ;;  %v1088_v47 = vpop.permute.xlu1 %1087 }
 0x410   : > { %v2806_v51 = vpop.xlane.xlu0 %839  ;;  %v1150_v52 = vsel %vm804_vm2, %v1088_v47, 0.0 }
 0x414   : > { %v1078_v53 = vpop.permute.xlu0 %1077 }
 0x415   : > { %v1135_v54 = vsel %vm804_vm2, %v1078_v53, 0.0  ;;  %v939_v53 = vpop.permute.xlu1 %938 }
 0x416   : > { %1136 = vadd.xlane.f32.xlu1 %v1135_v54  ;;  %v1000_v54 = vsel %vm804_vm2, %v939_v53, 0.0 }
 0x418   : > { %v937_v3 = vpop.permute.xlu0 %936 }
 0x419   : > { %v997_v20 = vsel %vm804_vm2, %v937_v3, 0.0 }
 0x41a   : > { %998 = vadd.xlane.f32.xlu1 %v997_v20 }
 0x42e   : > { %962 = vadd.xlane.f32.xlu0 %v961_v27 }
 0x42f   : > { %v2846_v0 = vpop.xlane.xlu1 %848 }
 0x432   : > { %1106 = vadd.xlane.f32.xlu0 %v1105_v6 }
 0x433   : > { %v1110_v1 = vpop.xlane.xlu1 %1109 }
 0x434   : > { %v1154_v17 = vadd.f32 %v2848_v8, %v1110_v1 }
 0x436   : > { %1115 = vadd.xlane.f32.xlu0 %v1114_v9 }
 0x437   : > { %v960_v27 = vpop.xlane.xlu1 %959 }
 0x438   : > { %v1006_v11 = vadd.f32 %v2848_v8, %v960_v27 }
 0x43a   : > { %965 = vadd.xlane.f32.xlu0 %v964_v10  ;;  %v860_v10 = vadd.f32 %v2848_v8, %v2801_v43 }
 0x43b   : > { %v969_v6 = vpop.xlane.xlu1 %968 }
 0x43e   : > { %1112 = vadd.xlane.f32.xlu0 %v1111_v12 }
 0x442   : > { %1121 = vadd.xlane.f32.xlu0 %v1120_v63  ;;  %v859_v63 = vadd.f32 %v2848_v8, %v2754_v57 }
 0x446   : > { %971 = vadd.xlane.f32.xlu0 %v970_v18  ;;  %v975_v18 = vpop.xlane.xlu1 %974 }
 0x449   : > { %v2825_v19 = vpop.xlane.xlu0 %845 }
 0x44a   : > { %1127 = vadd.xlane.f32.xlu0 %v1126_v21  ;;  %v2861_v57 = vpop.xlane.xlu1 %1118 }
 0x44d   : > { %v1082_v26 = vpop.permute.xlu0 %1081 }
 0x44e   : > { %977 = vadd.xlane.f32.xlu0 %v976_v28  ;;  %v1141_v29 = vsel %vm804_vm2, %v1082_v26, 0.0  ;;  %v1169_v26 = vmax.f32 %v859_v63, %v1006_v11 }
 0x44f   : > { %1142 = vadd.xlane.f32.xlu1 %v1141_v29 }
 0x451   : > { %v941_v30 = vpop.permute.xlu0 %940 }
 0x452   : > { %1133 = vadd.xlane.f32.xlu0 %v1132_v34  ;;  %v1003_v36 = vsel %vm804_vm2, %v941_v30, 0.0  ;;  %v1009_v30 = vadd.f32 %v2848_v8, %v969_v6 }
 0x453   : > { %1004 = vadd.xlane.f32.xlu1 %v1003_v36 }
 0x456   : > { %983 = vadd.xlane.f32.xlu0 %v982_v38  ;;  %v862_v38 = vadd.f32 %v2848_v8, %v2756_v58 }
 0x45a   : > { %1139 = vadd.xlane.f32.xlu0 %v1138_v40 }
 0x45e   : > { %989 = vadd.xlane.f32.xlu0 %v988_v42 }
 0x462   : > { %1145 = vadd.xlane.f32.xlu0 %v1144_v22 }
 0x466   : > { %995 = vadd.xlane.f32.xlu0 %v994_v50  ;;  %v1172_v50 = vmax.f32 %v862_v38, %v1009_v30 }
 0x46a   : > { %1151 = vadd.xlane.f32.xlu0 %v1150_v52 }
 0x46e   : > { %1001 = vadd.xlane.f32.xlu0 %v1000_v54 }
 0x482   : > { %v2843_v3 = vpop.xlane.xlu0 %851 }
 0x486   : > { %v1086_v20 = vpop.permute.xlu0 %1085 }
 0x487   : > { %v1147_v60 = vsel %vm804_vm2, %v1086_v20, 0.0 }
 0x488   : > { %1148 = vadd.xlane.f32.xlu1 %v1147_v60 }
 0x4b7   : > { %v963_v9 = vpop.xlane.xlu0 %962 }
 0x4b8   : > { %v1007_v12 = vadd.f32 %v2848_v8, %v963_v9 }
 0x4ba   : > { %v1170_v21 = vmax.f32 %v860_v10, %v1007_v12 }
 0x4bb   : > { %v1107_v24 = vpop.xlane.xlu0 %1106 }
 0x4bc   : > { %v1186_v28 = vmax.f32 %v1170_v21, %v1154_v17  ;;  %v1153_v29 = vadd.f32 %v2848_v8, %v1107_v24 }
 0x4be   : > { %v1202_v34 = vsub.f32 %v860_v10, %v1186_v28  ;;  %v1250_v43 = vsub.f32 %v1007_v12, %v1186_v28  ;;  %v1298_v36 = vsub.f32 %v1154_v17, %v1186_v28  ;;  %v1185_v37 = vmax.f32 %v1169_v26, %v1153_v29 }
 0x4bf   : > { %v1116_v40 = vpop.xlane.xlu0 %1115  ;;  %v861_v12 = vadd.f32 %v2848_v8, %v2762_v61 }
 0x4c0   : > { %v1219_v41 = vmul.f32 1.442695, %v1202_v34  ;;  %v1267_v42 = vmul.f32 1.442695, %v1250_v43  ;;  %v1315_v22 = vmul.f32 1.442695, %v1298_v36  ;;  %v1201_v47 = vsub.f32 %v859_v63, %v1185_v37 }
 0x4c1   : > { %v1249_v52 = vsub.f32 %v1006_v11, %v1185_v37  ;;  %v1297_v53 = vsub.f32 %v1153_v29, %v1185_v37  ;;  %v1156_v54 = vadd.f32 %v2848_v8, %v1116_v40  ;;  %v981_v11 = vpop.xlane.xlu1 %980  ;;  %v1011_v63 = vadd.f32 %v2848_v8, %v975_v18 }
 0x4c2   : > { %2200 = vpow2.f32 %v1219_v41  ;;  %v1217_v20 = vmul.f32 1.442695, %v1201_v47  ;;  %v864_v34 = vadd.f32 %v2848_v8, %v2773_v7  ;;  %v863_v7 = vadd.f32 %v2848_v8, %v2810_v62 }
 0x4c3   : > { %2202 = vpow2.f32 %v1267_v42  ;;  %v1265_v60 = vmul.f32 1.442695, %v1249_v52  ;;  %v1188_v1 = vmax.f32 %v1172_v50, %v1156_v54  ;;  %v966_v27 = vpop.xlane.xlu0 %965  ;;  %v1313_v58 = vmul.f32 1.442695, %v1297_v53 }
 0x4c4   : > { %2204 = vpow2.f32 %v1315_v22  ;;  %v1008_v6 = vadd.f32 %v2848_v8, %v966_v27  ;;  %v1174_v43 = vmax.f32 %v864_v34, %v1011_v63  ;;  %v1013_v52 = vadd.f32 %v2848_v8, %v981_v11 }
 0x4c5   : > { %2206 = vpow2.f32 %v1217_v20  ;;  %v1204_v9 = vsub.f32 %v862_v38, %v1188_v1  ;;  %v1252_v10 = vsub.f32 %v1009_v30, %v1188_v1  ;;  %v1300_v24 = vsub.f32 %v1156_v54, %v1188_v1  ;;  %v2871_v37 = vpop.xlane.xlu1 %1124 }
 0x4c6   : > { %2208 = vpow2.f32 %v1265_v60  ;;  %v1171_v28 = vmax.f32 %v861_v12, %v1008_v6 }
 0x4c7   : > { %v1223_v17 = vmul.f32 1.442695, %v1204_v9  ;;  %v1271_v21 = vmul.f32 1.442695, %v1252_v10  ;;  %v1113_v26 = vpop.xlane.xlu0 %1112  ;;  %2210 = vpow2.f32 %v1313_v58  ;;  %v1319_v61 = vmul.f32 1.442695, %v1300_v24 }
 0x4c8   : > { %v1155_v29 = vadd.f32 %v2848_v8, %v1113_v26 }
 0x4c9   : > { %2212 = vpow2.f32 %v1223_v17  ;;  %v987_v11 = vpop.xlane.xlu1 %986 }
 0x4ca   : > { %2214 = vpow2.f32 %v1271_v21  ;;  %v1187_v30 = vmax.f32 %v1171_v28, %v1155_v29 }
 0x4cb   : > { %v1122_v36 = vpop.xlane.xlu0 %1121  ;;  %2216 = vpow2.f32 %v1319_v61 }
 0x4cc   : > { %v1203_v18 = vsub.f32 %v861_v12, %v1187_v30  ;;  %v1251_v38 = vsub.f32 %v1008_v6, %v1187_v30  ;;  %v1299_v40 = vsub.f32 %v1155_v29, %v1187_v30  ;;  %v1158_v41 = vadd.f32 %v2848_v8, %v1122_v36 }
 0x4cd   : > { %v866_v6 = vadd.f32 %v2848_v8, %v2779_v14  ;;  %v1157_v12 = vadd.f32 %v2848_v8, %v2861_v57  ;;  %v1131_v36 = vpop.xlane.xlu1 %1130 }
 0x4ce   : > { %v1221_v42 = vmul.f32 1.442695, %v1203_v18  ;;  %v1269_v22 = vmul.f32 1.442695, %v1251_v38  ;;  %v1190_v47 = vmax.f32 %v1174_v43, %v1158_v41  ;;  %v1317_v53 = vmul.f32 1.442695, %v1299_v40 }
 0x4cf   : > { %v2874_v50 = vpop.eup %2200  ;;  %v972_v54 = vpop.xlane.xlu0 %971  ;;  %v1176_v24 = vmax.f32 %v866_v6, %v1013_v52 }
 0x4d0   : > { %v2879_v20 = vpop.eup %2202  ;;  %2218 = vpow2.f32 %v1221_v42  ;;  %v1206_v60 = vsub.f32 %v864_v34, %v1190_v47  ;;  %v1254_v1 = vsub.f32 %v1011_v63, %v1190_v47  ;;  %v1302_v27 = vsub.f32 %v1158_v41, %v1190_v47 }
 0x4d1   : > { %v2881_v58 = vpop.eup %2204  ;;  %v1346_v9 = vadd.f32 %v2879_v20, %v2874_v50  ;;  %2220 = vpow2.f32 %v1269_v22  ;;  %v1010_v62 = vadd.f32 %v2848_v8, %v972_v54 }
 0x4d2   : > { %v2888_v10 = vpop.eup %2206  ;;  %v1227_v17 = vmul.f32 1.442695, %v1206_v60  ;;  %v1275_v63 = vmul.f32 1.442695, %v1254_v1  ;;  %2222 = vpow2.f32 %v1317_v53  ;;  %v1323_v34 = vmul.f32 1.442695, %v1302_v27 }
 0x4d3   : > { %v2892_v21 = vpop.eup %2208  ;;  %v1362_v26 = vadd.f32 %v2881_v58, %v1346_v9  ;;  %v1173_v14 = vmax.f32 %v863_v7, %v1010_v62  ;;  %v1128_v28 = vpop.xlane.xlu0 %1127  ;;  %v2906_v53 = vadd.f32 %v2848_v8, %v987_v11  ;;  %v1159_v11 = vadd.f32 %v2848_v8, %v2871_v37 }
 0x4d4   : > { %v1345_v29 = vadd.f32 %v2892_v21, %v2888_v10  ;;  %2224 = vpow2.f32 %v1227_v17  ;;  %v1160_v30 = vadd.f32 %v2848_v8, %v1128_v28  ;;  %v2898_v43 = vpop.eup %2210  ;;  %v865_v17 = vadd.f32 %v2848_v8, %v2814_v5 }
 0x4d5   : > { %2226 = vrcp.f32 %v1362_v26  ;;  %v1189_v57 = vmax.f32 %v1173_v14, %v1157_v12  ;;  %v993_v14 = vpop.xlane.xlu1 %992 }
 0x4d6   : > { %v2900_v61 = vpop.eup %2212  ;;  %v1361_v18 = vadd.f32 %v2898_v43, %v1345_v29  ;;  %2228 = vpow2.f32 %v1275_v63  ;;  %v1192_v38 = vmax.f32 %v1176_v24, %v1160_v30 }
 0x4d7   : > { %v2903_v40 = vpop.eup %2214  ;;  %v1205_v41 = vsub.f32 %v863_v7, %v1189_v57  ;;  %v1253_v42 = vsub.f32 %v1010_v62, %v1189_v57  ;;  %v1301_v22 = vsub.f32 %v1157_v12, %v1189_v57  ;;  %v978_v47 = vpop.xlane.xlu0 %977  ;;  %2230 = vpow2.f32 %v1323_v34 }
 0x4d8   : > { %v1208_v54 = vsub.f32 %v866_v6, %v1192_v38  ;;  %v1256_v60 = vsub.f32 %v1013_v52, %v1192_v38  ;;  %2232 = vrcp.f32 %v1361_v18  ;;  %v1348_v1 = vadd.f32 %v2903_v40, %v2900_v61  ;;  %v2917_v24 = vpop.eup %2216 }
 0x4d9   : > { %v1225_v27 = vmul.f32 1.442695, %v1205_v41  ;;  %v1273_v9 = vmul.f32 1.442695, %v1253_v42  ;;  %v868_v7 = vadd.f32 %v2848_v8, %v2791_v31  ;;  %v1321_v62 = vmul.f32 1.442695, %v1301_v22 }
 0x4da   : > { %v1012_v12 = vadd.f32 %v2848_v8, %v978_v47  ;;  %v1231_v52 = vmul.f32 1.442695, %v1208_v54  ;;  %v1304_v6 = vsub.f32 %v1160_v30, %v1192_v38  ;;  %v1279_v28 = vmul.f32 1.442695, %v1256_v60 }
 0x4db   : > { %2234 = vpow2.f32 %v1225_v27  ;;  %v1134_v63 = vpop.xlane.xlu0 %1133  ;;  %v1178_v26 = vmax.f32 %v868_v7, %v2906_v53  ;;  %v1364_v34 = vadd.f32 %v2917_v24, %v1348_v1  ;;  %v2930_v30 = vadd.f32 %v2848_v8, %v2821_v13 }
 0x4dc   : > { %v1175_v5 = vmax.f32 %v865_v17, %v1012_v12  ;;  %v2921_v29 = vadd.f32 %v2848_v8, %v1134_v63  ;;  %2236 = vpow2.f32 %v1273_v9  ;;  %v2936_v38 = vadd.f32 %v2848_v8, %v993_v14 }
 0x4dd   : > { %v2923_v31 = vpop.eup %2218  ;;  %2238 = vpow2.f32 %v1321_v62  ;;  %v1327_v42 = vmul.f32 1.442695, %v1304_v6  ;;  %v2946_v27 = vadd.f32 %v2848_v8, %v2806_v51  ;;  %v2949_v9 = vadd.f32 %v2848_v8, %v1131_v36  ;;  %v2951_v62 = vpop.xlane.xlu1 %1136 }
 0x4de   : > { %v2926_v37 = vpop.eup %2220  ;;  %v1191_v57 = vmax.f32 %v1175_v5, %v1159_v11  ;;  %v2933_v18 = vmax.f32 %v1178_v26, %v2921_v29  ;;  %2240 = vpow2.f32 %v1231_v52 }
 0x4df   : > { %v1347_v41 = vadd.f32 %v2926_v37, %v2923_v31  ;;  %v984_v22 = vpop.xlane.xlu0 %983  ;;  %v2940_v47 = vpop.eup %2222  ;;  %2242 = vpow2.f32 %v1279_v28  ;;  %v1180_v51 = vmax.f32 %v2946_v27, %v2936_v38 }
 0x4e0   : > { %v1207_v54 = vsub.f32 %v865_v17, %v1191_v57  ;;  %v1255_v13 = vsub.f32 %v1012_v12, %v1191_v57  ;;  %v1303_v60 = vsub.f32 %v1159_v11, %v1191_v57  ;;  %2244 = vrcp.f32 %v1364_v34 }
 0x4e1   : > { %v2942_v1 = vpop.eup %2224  ;;  %v1210_v52 = vsub.f32 %v868_v7, %v2933_v18  ;;  %v1363_v63 = vadd.f32 %v2940_v47, %v1347_v41  ;;  %v1258_v11 = vsub.f32 %v2906_v53, %v2933_v18  ;;  %2246 = vpow2.f32 %v1327_v42 }
 0x4e2   : > { %v2227_v6 = vpop.eup %2226  ;;  %v1229_v17 = vmul.f32 1.442695, %v1207_v54  ;;  %v1277_v12 = vmul.f32 1.442695, %v1255_v13  ;;  %v1325_v36 = vmul.f32 1.442695, %v1303_v60  ;;  %v1014_v14 = vadd.f32 %v2848_v8, %v984_v22  ;;  %v999_v60 = vpop.xlane.xlu1 %998 }
 0x4e3   : > { %v2957_v26 = vpop.eup %2228  ;;  %v1140_v28 = vpop.xlane.xlu0 %1139  ;;  %v1235_v5 = vmul.f32 1.442695, %v1210_v52  ;;  %v1410_v41 = vmul.f32 %v2227_v6, %v2879_v20  ;;  %v1394_v42 = vmul.f32 %v2227_v6, %v2874_v50  ;;  %v1283_v13 = vmul.f32 1.442695, %v1258_v11 }
 0x4e4   : > { %v1350_v7 = vadd.f32 %v2957_v26, %v2942_v1  ;;  %2248 = vpow2.f32 %v1229_v17  ;;  %v2965_v34 = vadd.f32 %v2848_v8, %v1140_v28  ;;  %v2967_v57 = vpop.eup %2230  ;;  %v1177_v53 = vmax.f32 %v2930_v30, %v1014_v14 }
 0x4e5   : > { %2250 = vpow2.f32 %v1277_v12  ;;  %v2233_v54 = vpop.eup %2232  ;;  %1544 = vperm.xlu1 %2199, %v1410_v41   ;;  %1448 = vperm.xlu0 %2198, %v1394_v42   ;;  %v1306_v50 = vsub.f32 %v2921_v29, %v2933_v18  ;;  %v1426_v20 = vmul.f32 %v2227_v6, %v2881_v58 }
 0x4e6   : > { %2252 = vrcp.f32 %v1363_v63  ;;  %v1366_v22 = vadd.f32 %v2967_v57, %v1350_v7  ;;  %v1193_v52 = vmax.f32 %v1177_v53, %v2949_v9  ;;  %v2975_v17 = vmax.f32 %v1180_v51, %v2965_v34 }
 0x4e7   : > { %2254 = vpow2.f32 %v1325_v36  ;;  %v990_v12 = vpop.xlane.xlu0 %989  ;;  %v1393_v36 = vmul.f32 %v2233_v54, %v2888_v10  ;;  %v869_v51 = vadd.f32 %v2848_v8, %v2829_v59  ;;  %v2990_v53 = vadd.f32 %v2848_v8, %v2825_v19 }
 0x4e8   : > { %v2977_v28 = vpop.eup %2234  ;;  %2256 = vpow2.f32 %v1235_v5  ;;  %v1209_v63 = vsub.f32 %v2930_v30, %v1193_v52  ;;  %v1257_v11 = vsub.f32 %v1014_v14, %v1193_v52  ;;  %v2993_v5 = vadd.f32 %v2848_v8, %v999_v60 }
 0x4e9   : > { %2258 = vrcp.f32 %v1366_v22  ;;  %v2984_v7 = vpop.eup %2236  ;;  %v1212_v18 = vsub.f32 %v2946_v27, %v2975_v17  ;;  %1720 = vperm.xlu0 %2198, %v1426_v20   ;;  %1443 = vperm.xlu1 %2199, %v1393_v36   ;;  %v1331_v19 = vmul.f32 1.442695, %v1306_v50  ;;  %v1305_v14 = vsub.f32 %v2949_v9, %v1193_v52 }
 0x4ea   : > { %2260 = vpow2.f32 %v1283_v13  ;;  %v2995_v58 = vpop.eup %2238  ;;  %v1349_v29 = vadd.f32 %v2984_v7, %v2977_v28  ;;  %v1233_v30 = vmul.f32 1.442695, %v1209_v63  ;;  %v1281_v10 = vmul.f32 1.442695, %v1257_v11 }
 0x4eb   : > { %v1146_v59 = vpop.xlane.xlu0 %1145  ;;  %v3001_v6 = vpop.eup %2240  ;;  %v1016_v41 = vadd.f32 %v2848_v8, %v990_v12  ;;  %v1409_v42 = vmul.f32 %v2233_v54, %v2892_v21  ;;  %v1260_v27 = vsub.f32 %v2936_v38, %v2975_v17  ;;  %v1425_v60 = vmul.f32 %v2233_v54, %v2898_v43 }
 0x4ec   : > { %v3006_v22 = vpop.eup %2242  ;;  %v1365_v13 = vadd.f32 %v2995_v58, %v1349_v29  ;;  %2262 = vpow2.f32 %v1233_v30  ;;  %v3014_v50 = vadd.f32 %v2848_v8, %v2951_v62  ;;  %v1239_v52 = vmul.f32 1.442695, %v1212_v18 }
 0x4ed   : > { %v2245_v20 = vpop.eup %2244  ;;  %v1352_v9 = vadd.f32 %v3006_v22, %v3001_v6  ;;  %2264 = vpow2.f32 %v1281_v10  ;;  %v1179_v21 = vmax.f32 %v869_v51, %v1016_v41  ;;  %v3019_v12 = vadd.f32 %v2848_v8, %v1146_v59  ;;  %1539 = vperm.xlu0 %2198, %v1409_v42   ;;  %1715 = vperm.xlu1 %2199, %v1425_v60   ;;  %v1143_v60 = vpop.xlane.xlu1 %1142 }
 0x4ee   : > { %2266 = vrcp.f32 %v1365_v13  ;;  %v3021_v63 = vpop.eup %2246  ;;  %v1182_v43 = vmax.f32 %v2990_v53, %v2993_v5  ;;  %v1329_v62 = vmul.f32 1.442695, %v1305_v14  ;;  %v1287_v36 = vmul.f32 1.442695, %v1260_v27 }
 0x4ef   : > { %v996_v38 = vpop.xlane.xlu0 %995  ;;  %2268 = vpow2.f32 %v1331_v19  ;;  %v1195_v54 = vmax.f32 %v1179_v21, %v3014_v50  ;;  %v1428_v30 = vmul.f32 %v2245_v20, %v2917_v24  ;;  %v1396_v10 = vmul.f32 %v2245_v20, %v2900_v61 }
 0x4f0   : > { %v3029_v29 = vadd.f32 %v2848_v8, %v996_v38  ;;  %v871_v59 = vadd.f32 %v2848_v8, %v2837_v46  ;;  %v1368_v19 = vadd.f32 %v3021_v63, %v1352_v9  ;;  %2270 = vpow2.f32 %v1239_v52 }
 0x4f1   : > { %v3026_v11 = vpop.eup %2248  ;;  %v1211_v14 = vsub.f32 %v869_v51, %v1195_v54  ;;  %v1259_v42 = vsub.f32 %v1016_v41, %v1195_v54  ;;  %v3041_v21 = vmax.f32 %v1182_v43, %v3019_v12  ;;  %1730 = vperm.xlu0 %2198, %v1428_v30   ;;  %1458 = vperm.xlu1 %2199, %v1396_v10   ;;  %2272 = vpow2.f32 %v1329_v62 }
 0x4f2   : > { %v3033_v18 = vpop.eup %2250  ;;  %v1308_v46 = vsub.f32 %v2965_v34, %v2975_v17  ;;  %v1181_v51 = vmax.f32 %v871_v59, %v3029_v29  ;;  %2274 = vpow2.f32 %v1287_v36  ;;  %v1412_v52 = vmul.f32 %v2245_v20, %v2903_v40 }
 0x4f3   : > { %v2253_v13 = vpop.eup %2252  ;;  %v1351_v27 = vadd.f32 %v3033_v18, %v3026_v11  ;;  %v1237_v24 = vmul.f32 1.442695, %v1211_v14  ;;  %2276 = vrcp.f32 %v1368_v19  ;;  %v3055_v43 = vadd.f32 %v2848_v8, %v1143_v60 }
 0x4f4   : > { %v3043_v61 = vpop.eup %2254  ;;  %v1285_v62 = vmul.f32 1.442695, %v1259_v42  ;;  %v1411_v30 = vmul.f32 %v2253_v13, %v2926_v37  ;;  %v1214_v17 = vsub.f32 %v2990_v53, %v3041_v21  ;;  %v1335_v10 = vmul.f32 1.442695, %v1308_v46 }
 0x4f5   : > { %v3048_v41 = vpop.eup %2256  ;;  %v1367_v9 = vadd.f32 %v3043_v61, %v1351_v27  ;;  %1554 = vperm.xlu1 %2199, %v1412_v52   ;;  %2278 = vpow2.f32 %v1237_v24  ;;  %v1307_v36 = vsub.f32 %v3014_v50, %v1195_v54  ;;  %v1197_v40 = vmax.f32 %v1181_v51, %v3055_v43 }
 0x4f6   : > { %v3052_v38 = vpop.eup %2258  ;;  %1549 = vperm.xlu0 %2198, %v1411_v30   ;;  %v1262_v20 = vsub.f32 %v2993_v5, %v3041_v21  ;;  %v1395_v19 = vmul.f32 %v2253_v13, %v2923_v31  ;;  %v1243_v50 = vmul.f32 1.442695, %v1214_v17  ;;  %v1427_v24 = vmul.f32 %v2253_v13, %v2940_v47 }
 0x4f7   : > { %v3058_v34 = vpop.eup %2260  ;;  %2280 = vrcp.f32 %v1367_v9  ;;  %v1430_v53 = vmul.f32 %v3052_v38, %v2967_v57  ;;  %v1333_v27 = vmul.f32 1.442695, %v1307_v36  ;;  %v1213_v60 = vsub.f32 %v871_v59, %v1197_v40  ;;  %v1005_v9 = vpop.xlane.xlu1 %1004 }
 0x4f8   : > { %v1354_v14 = vadd.f32 %v3058_v34, %v3048_v41  ;;  %2282 = vpow2.f32 %v1285_v62  ;;  %v1291_v31 = vmul.f32 1.442695, %v1262_v20  ;;  %v1261_v46 = vsub.f32 %v3029_v29, %v1197_v40  ;;  %v1152_v29 = vpop.xlane.xlu0 %1151 }
 0x4f9   : > { %v3067_v37 = vpop.eup %2262  ;;  %1453 = vperm.xlu1 %2199, %v1395_v19   ;;  %2284 = vpow2.f32 %v1335_v10  ;;  %v1310_v59 = vsub.f32 %v3019_v12, %v3041_v21  ;;  %v1241_v30 = vmul.f32 1.442695, %v1213_v60  ;;  %v1398_v17 = vmul.f32 %v3052_v38, %v2942_v1 }
 0x4fa   : > { %v3073_v42 = vpop.eup %2264  ;;  %1740 = vperm.xlu0 %2198, %v1430_v53   ;;  %2286 = vpow2.f32 %v1243_v50  ;;  %v1289_v13 = vmul.f32 1.442695, %v1261_v46  ;;  %v874_v20 = vadd.f32 %v2848_v8, %v2843_v3  ;;  %v1309_v53 = vsub.f32 %v3055_v43, %v1197_v40 }
 0x4fb   : > { %v2267_v54 = vpop.eup %2266  ;;  %v1353_v52 = vadd.f32 %v3073_v42, %v3067_v37  ;;  %2288 = vpow2.f32 %v1333_v27  ;;  %v1339_v19 = vmul.f32 1.442695, %v1310_v59  ;;  %v1414_v27 = vmul.f32 %v3052_v38, %v2957_v26 }
 0x4fc   : > { %v3075_v5 = vpop.eup %2268  ;;  %v1397_v51 = vmul.f32 %v2267_v54, %v2977_v28  ;;  %v1021_v28 = vadd.f32 %v2848_v8, %v1005_v9  ;;  %2290 = vpow2.f32 %v1291_v31  ;;  %v1413_v21 = vmul.f32 %v2267_v54, %v2984_v7 }
 0x4fd   : > { %v1370_v57 = vadd.f32 %v3075_v5, %v1354_v14  ;;  %1725 = vperm.xlu1 %2199, %v1427_v24   ;;  %v3085_v62 = vpop.eup %2270  ;;  %v1168_v14 = vadd.f32 %v2848_v8, %v1152_v29  ;;  %v1337_v43 = vmul.f32 1.442695, %v1309_v53  ;;  %v1429_v24 = vmul.f32 %v2267_v54, %v2995_v58 }
 0x4fe   : > { %1463 = vperm.xlu0 %2198, %v1397_v51   ;;  %v3087_v47 = vpop.eup %2272  ;;  %v1184_v50 = vmax.f32 %v874_v20, %v1021_v28 }
 0x4ff   : > { %v3092_v10 = vpop.eup %2274  ;;  %2292 = vrcp.f32 %v1370_v57  ;;  %v1369_v12 = vadd.f32 %v3087_v47, %v1353_v52 }
 0x500   : > { %v2277_v36 = vpop.eup %2276  ;;  %2294 = vpow2.f32 %v1241_v30  ;;  %v1356_v3 = vadd.f32 %v3092_v10, %v3085_v62  ;;  %v1200_v46 = vmax.f32 %v1184_v50, %v1168_v14 }
 0x501   : > { %1468 = vperm.xlu1 %2199, %v1398_v17   ;;  %2296 = vpow2.f32 %v1289_v13  ;;  %v1432_v60 = vmul.f32 %v2277_v36, %v3021_v63  ;;  %v1002_v63 = vpop.xlane.xlu0 %1001  ;;  %v1400_v30 = vmul.f32 %v2277_v36, %v3001_v6 }
 0x502   : > { %1559 = vperm.xlu0 %2198, %v1413_v21   ;;  %v3100_v1 = vpop.eup %2278  ;;  %2298 = vrcp.f32 %v1369_v12  ;;  %v1216_v57 = vsub.f32 %v874_v20, %v1200_v46  ;;  %v1264_v52 = vsub.f32 %v1021_v28, %v1200_v46  ;;  %v1020_v29 = vadd.f32 %v2848_v8, %v1002_v63 }
 0x503   : > { %2300 = vpow2.f32 %v1339_v19  ;;  %v873_v28 = vadd.f32 %v2848_v8, %v2846_v0  ;;  %v1312_v21 = vsub.f32 %v1168_v14, %v1200_v46  ;;  %v1416_v19 = vmul.f32 %v2277_v36, %v3006_v22 }
 0x504   : > { %v2281_v7 = vpop.eup %2280  ;;  %2302 = vpow2.f32 %v1337_v43  ;;  %v1247_v17 = vmul.f32 1.442695, %v1216_v57  ;;  %v1295_v12 = vmul.f32 1.442695, %v1264_v52 }
 0x505   : > { %v3107_v31 = vpop.eup %2282  ;;  %1564 = vperm.xlu1 %2199, %v1414_v27   ;;  %v1399_v51 = vmul.f32 %v2281_v7, %v3026_v11  ;;  %v1415_v11 = vmul.f32 %v2281_v7, %v3033_v18  ;;  %v1183_v18 = vmax.f32 %v873_v28, %v1020_v29  ;;  %v1431_v36 = vmul.f32 %v2281_v7, %v3043_v61 }
 0x506   : > { %1750 = vperm.xlu0 %2198, %v1432_v60   ;;  %v3109_v40 = vpop.eup %2284  ;;  %v1355_v38 = vadd.f32 %v3107_v31, %v3100_v1  ;;  %v1343_v60 = vmul.f32 1.442695, %v1312_v21 }
 0x507   : > { %v1372_v26 = vadd.f32 %v3109_v40, %v1356_v3  ;;  %v3116_v9 = vpop.eup %2286 }
 0x508   : > { %v3118_v59 = vpop.eup %2288 }
 0x509   : > { %1735 = vperm.xlu1 %2199, %v1429_v24   ;;  %v3121_v58 = vpop.eup %2290  ;;  %2304 = vrcp.f32 %v1372_v26  ;;  %v1371_v54 = vadd.f32 %v3118_v59, %v1355_v38 }
 0x50a   : > { %1473 = vperm.xlu0 %2198, %v1399_v51   ;;  %v1358_v6 = vadd.f32 %v3121_v58, %v3116_v9 }
 0x50b   : > { %2306 = vrcp.f32 %v1371_v54 }
 0x50c   : > { %v2293_v13 = vpop.eup %2292  ;;  %2308 = vpow2.f32 %v1247_v17 }
 0x50d   : > { %1478 = vperm.xlu1 %2199, %v1400_v30   ;;  %v3128_v20 = vpop.eup %2294  ;;  %v1434_v27 = vmul.f32 %v2293_v13, %v3075_v5  ;;  %2310 = vpow2.f32 %v1295_v12  ;;  %v1402_v52 = vmul.f32 %v2293_v13, %v3048_v41 }
 0x50e   : > { %1569 = vperm.xlu0 %2198, %v1415_v11   ;;  %v3133_v50 = vpop.eup %2296  ;;  %2312 = vpow2.f32 %v1343_v60 }
 0x50f   : > { %v2299_v0 = vpop.eup %2298  ;;  %v1357_v22 = vadd.f32 %v3133_v50, %v3128_v20 }
 0x510   : > { %v2301_v14 = vpop.eup %2300  ;;  %v1401_v5 = vmul.f32 %v2299_v0, %v3067_v37  ;;  %v1417_v54 = vmul.f32 %v2299_v0, %v3073_v42  ;;  %v1418_v37 = vmul.f32 %v2293_v13, %v3058_v34  ;;  %v1433_v41 = vmul.f32 %v2299_v0, %v3087_v47 }
 0x511   : > { %v1149_v53 = vpop.xlane.xlu1 %1148  ;;  %1574 = vperm.xlu1 %2199, %v1416_v19   ;;  %v1374_v43 = vadd.f32 %v2301_v14, %v1358_v6  ;;  %v2303_v57 = vpop.eup %2302 }
 0x512   : > { %v1167_v3 = vadd.f32 %v2848_v8, %v1149_v53  ;;  %1760 = vperm.xlu0 %2198, %v1434_v27   ;;  %v1373_v30 = vadd.f32 %v2303_v57, %v1357_v22 }
 0x513   : > { %2314 = vrcp.f32 %v1374_v43 }
 0x514   : > { %v1199_v46 = vmax.f32 %v1183_v18, %v1167_v3 }
 0x515   : > { %1745 = vperm.xlu1 %2199, %v1431_v36  }
 0x516   : > { %v1215_v24 = vsub.f32 %v873_v28, %v1199_v46  ;;  %v1263_v26 = vsub.f32 %v1020_v29, %v1199_v46  ;;  %v1311_v38 = vsub.f32 %v1167_v3, %v1199_v46  ;;  %1483 = vperm.xlu0 %2198, %v1401_v5   ;;  %v2305_v61 = vpop.eup %2304 }
 0x517   : > { %v1436_v7 = vmul.f32 %v2305_v61, %v3109_v40  ;;  %v1404_v21 = vmul.f32 %v2305_v61, %v3085_v62  ;;  %v1420_v18 = vmul.f32 %v2305_v61, %v3092_v10 }
 0x518   : > { %v1245_v8 = vmul.f32 1.442695, %v1215_v24  ;;  %v1293_v51 = vmul.f32 1.442695, %v1263_v26  ;;  %v1341_v63 = vmul.f32 1.442695, %v1311_v38  ;;  %v2307_v29 = vpop.eup %2306 }
 0x519   : > { %1488 = vperm.xlu1 %2199, %v1402_v52   ;;  %v2309_v11 = vpop.eup %2308  ;;  %v1403_v28 = vmul.f32 %v2307_v29, %v3100_v1  ;;  %v1419_v34 = vmul.f32 %v2307_v29, %v3107_v31  ;;  %v1435_v62 = vmul.f32 %v2307_v29, %v3118_v59 }
 0x51a   : > { %2316 = vpow2.f32 %v1245_v8  ;;  %1579 = vperm.xlu0 %2198, %v1417_v54   ;;  %v2311_v17 = vpop.eup %2310 }
 0x51b   : > { %2318 = vpow2.f32 %v1293_v51  ;;  %v1360_v42 = vadd.f32 %v2311_v17, %v2309_v11  ;;  %v2313_v12 = vpop.eup %2312 }
 0x51c   : > { %2320 = vpow2.f32 %v1341_v63 }
 0x51d   : > { %2322 = vrcp.f32 %v1373_v30  ;;  %1584 = vperm.xlu1 %2199, %v1418_v37   ;;  %v1376_v19 = vadd.f32 %v2313_v12, %v1360_v42 }
 0x51e   : > { %1770 = vperm.xlu0 %2198, %v1436_v7  }
 0x51f   : > { %2324 = vrcp.f32 %v1376_v19 }
 0x520   : > { %v2315_v6 = vpop.eup %2314 }
 0x521   : > { %1755 = vperm.xlu1 %2199, %v1433_v41   ;;  %v1438_v27 = vmul.f32 %v2315_v6, %v2301_v14  ;;  %v1406_v0 = vmul.f32 %v2315_v6, %v3116_v9  ;;  %v1422_v10 = vmul.f32 %v2315_v6, %v3121_v58 }
 0x522   : > { %1493 = vperm.xlu0 %2198, %v1403_v28  }
 0x525   : > { %1498 = vperm.xlu1 %2199, %v1404_v21  }
 0x526   : > { %1589 = vperm.xlu0 %2198, %v1419_v34  }
 0x527   : > { %v2317_v13 = vpop.eup %2316 }
 0x528   : > { %v2319_v40 = vpop.eup %2318 }
 0x529   : > { %v1359_v53 = vadd.f32 %v2319_v40, %v2317_v13  ;;  %v2321_v47 = vpop.eup %2320  ;;  %1594 = vperm.xlu1 %2199, %v1420_v18  }
 0x52a   : > { %v2323_v1 = vpop.eup %2322  ;;  %1780 = vperm.xlu0 %2198, %v1438_v27  }
 0x52b   : > { %v1375_v3 = vadd.f32 %v2321_v47, %v1359_v53  ;;  %v1405_v31 = vmul.f32 %v2323_v1, %v3128_v20  ;;  %v1421_v60 = vmul.f32 %v2323_v1, %v3133_v50  ;;  %v1437_v46 = vmul.f32 %v2323_v1, %v2303_v57 }
 0x52c   : > { %v2325_v14 = vpop.eup %2324 }
 0x52d   : > { %2326 = vrcp.f32 %v1375_v3  ;;  %1765 = vperm.xlu1 %2199, %v1435_v62   ;;  %v1408_v36 = vmul.f32 %v2325_v14, %v2309_v11  ;;  %v1424_v20 = vmul.f32 %v2325_v14, %v2311_v17  ;;  %v1440_v9 = vmul.f32 %v2325_v14, %v2313_v12 }
 0x52e   : > { %1503 = vperm.xlu0 %2198, %v1405_v31  }
 0x531   : > { %1508 = vperm.xlu1 %2199, %v1406_v0  }
 0x532   : > { %1599 = vperm.xlu0 %2198, %v1421_v60  }
 0x535   : > { %1604 = vperm.xlu1 %2199, %v1422_v10  }
 0x539   : > { %1775 = vperm.xlu1 %2199, %v1437_v46  }
 0x53a   : > { %v2327_v43 = vpop.eup %2326 }
 0x53b   : > { %v1407_v22 = vmul.f32 %v2327_v43, %v2317_v13  ;;  %v1423_v59 = vmul.f32 %v2327_v43, %v2319_v40  ;;  %v1439_v24 = vmul.f32 %v2327_v43, %v2321_v47 }
 0x53d   : > { %1513 = vperm.xlu0 %2198, %v1407_v22   ;;  %1518 = vperm.xlu1 %2199, %v1408_v36  }
 0x541   : > { %1609 = vperm.xlu0 %2198, %v1423_v59   ;;  %1614 = vperm.xlu1 %2199, %v1424_v20  }
 0x545   : > { %1790 = vperm.xlu0 %2198, %v1440_v9   ;;  %1785 = vperm.xlu1 %2199, %v1439_v24  }
 0x560   : > { %v1545_v50 = vpop.permute.xlu1 %1544  ;;  %v3155_v26 = vpop.permute.xlu0 %1448 }
 0x561   : > { %v1618_v58 = vmul.f32 %v1545_v50, %v2585_v23 }
 0x563   : > { %1651 = vrot.lane.b32.xlu1 %v1618_v58, %s2340_s17 }
 0x564   : > { %v3159_v38 = vpop.permute.xlu1 %1443  ;;  %v1721_v5 = vpop.permute.xlu0 %1720 }
 0x565   : > { %v1794_v8 = vmul.f32 %v1721_v5, %v2585_v23 }
 0x567   : > { %1827 = vrot.lane.b32.xlu1 %v1794_v8, %s2339_s14 }
 0x568   : > { %v1716_v51 = vpop.permute.xlu1 %1715  ;;  %v1540_v57 = vpop.permute.xlu0 %1539 }
 0x569   : > { %v1617_v63 = vmul.f32 %v1540_v57, %v2588_v25  ;;  %v1793_v54 = vmul.f32 %v1716_v51, %v2588_v25 }
 0x56b   : > { %1649 = vrot.lane.b32.xlu0 %v1617_v63, %s2340_s17 }
 0x56c   : > { %v3165_v52 = vpop.permute.xlu1 %1458  ;;  %v1731_v30 = vpop.permute.xlu0 %1730 }
 0x56d   : > { %v1796_v17 = vmul.f32 %v1731_v30, %v2608_v35 }
 0x56f   : > { %1825 = vrot.lane.b32.xlu0 %v1793_v54, %s2339_s14 }
 0x570   : > { %v1555_v61 = vpop.permute.xlu1 %1554 }
 0x571   : > { %v1620_v37 = vmul.f32 %v1555_v61, %v2608_v35  ;;  %v1550_v7 = vpop.permute.xlu0 %1549 }
 0x572   : > { %v1619_v29 = vmul.f32 %v1550_v7, %v2617_v39 }
 0x573   : > { %1655 = vrot.lane.b32.xlu1 %v1620_v37, %s2340_s17 }
 0x574   : > { %1653 = vrot.lane.b32.xlu0 %v1619_v29, %s2340_s17  ;;  %v3173_v11 = vpop.permute.xlu1 %1453 }
 0x575   : > { %v1741_v41 = vpop.permute.xlu0 %1740 }
 0x576   : > { %v1798_v18 = vmul.f32 %v1741_v41, %v2625_v44 }
 0x577   : > { %1831 = vrot.lane.b32.xlu1 %v1796_v17, %s2339_s14 }
 0x578   : > { %v1726_v28 = vpop.permute.xlu1 %1725 }
 0x579   : > { %v1795_v42 = vmul.f32 %v1726_v28, %v2617_v39  ;;  %v3178_v12 = vpop.permute.xlu0 %1463 }
 0x57b   : > { %1829 = vrot.lane.b32.xlu0 %v1795_v42, %s2339_s14 }
 0x57c   : > { %v3181_v21 = vpop.permute.xlu1 %1468 }
 0x57d   : > { %v1560_v6 = vpop.permute.xlu0 %1559 }
 0x57e   : > { %v1621_v34 = vmul.f32 %v1560_v6, %v2629_v45 }
 0x580   : > { %1657 = vrot.lane.b32.xlu0 %v1621_v34, %s2340_s17  ;;  %v1565_v13 = vpop.permute.xlu1 %1564 }
 0x581   : > { %v1622_v40 = vmul.f32 %v1565_v13, %v2625_v44  ;;  %v1751_v19 = vpop.permute.xlu0 %1750 }
 0x582   : > { %v1800_v14 = vmul.f32 %v1751_v19, %v2647_v55 }
 0x583   : > { %1659 = vrot.lane.b32.xlu1 %v1622_v40, %s2340_s17 }
 0x584   : > { %v1736_v53 = vpop.permute.xlu1 %1735 }
 0x585   : > { %v1797_v47 = vmul.f32 %v1736_v53, %v2629_v45  ;;  %v3189_v27 = vpop.permute.xlu0 %1473 }
 0x587   : > { %1835 = vrot.lane.b32.xlu1 %v1798_v18, %s2339_s14  ;;  %1833 = vrot.lane.b32.xlu0 %v1797_v47, %s2339_s14 }
 0x588   : > { %v3193_v1 = vpop.permute.xlu1 %1478 }
 0x589   : > { %v1570_v3 = vpop.permute.xlu0 %1569 }
 0x58a   : > { %v1623_v62 = vmul.f32 %v1570_v3, %v2650_v56 }
 0x58c   : > { %1661 = vrot.lane.b32.xlu0 %v1623_v62, %s2340_s17  ;;  %v1575_v31 = vpop.permute.xlu1 %1574 }
 0x58d   : > { %v1624_v0 = vmul.f32 %v1575_v31, %v2647_v55  ;;  %v1761_v60 = vpop.permute.xlu0 %1760 }
 0x58e   : > { %v1802_v58 = vmul.f32 %v1761_v60, %v2668_v2 }
 0x58f   : > { %1663 = vrot.lane.b32.xlu1 %v1624_v0, %s2340_s17 }
 0x590   : > { %v1746_v10 = vpop.permute.xlu1 %1745 }
 0x591   : > { %v1799_v46 = vmul.f32 %v1746_v10, %v2650_v56  ;;  %v3201_v43 = vpop.permute.xlu0 %1483 }
 0x593   : > { %1839 = vrot.lane.b32.xlu1 %v1800_v14, %s2339_s14  ;;  %1837 = vrot.lane.b32.xlu0 %v1799_v46, %s2339_s14 }
 0x594   : > { %v3205_v22 = vpop.permute.xlu1 %1488 }
 0x595   : > { %v1580_v36 = vpop.permute.xlu0 %1579 }
 0x596   : > { %v1625_v59 = vmul.f32 %v1580_v36, %v2671_v4  ;;  %v1522_v36 = vmul.f32 %v3155_v26, %v2585_v23 }
 0x598   : > { %1665 = vrot.lane.b32.xlu0 %v1625_v59, %s2340_s17  ;;  %v1585_v20 = vpop.permute.xlu1 %1584 }
 0x599   : > { %v1626_v9 = vmul.f32 %v1585_v20, %v2668_v2  ;;  %v1771_v24 = vpop.permute.xlu0 %1770 }
 0x59a   : > { %v1804_v7 = vmul.f32 %v1771_v24, %v2692_v15 }
 0x59b   : > { %1667 = vrot.lane.b32.xlu1 %v1626_v9, %s2340_s17 }
 0x59c   : > { %v1756_v50 = vpop.permute.xlu1 %1755 }
 0x59d   : > { %v1801_v5 = vmul.f32 %v1756_v50, %v2671_v4  ;;  %v3213_v8 = vpop.permute.xlu0 %1493 }
 0x59f   : > { %1843 = vrot.lane.b32.xlu1 %v1802_v58, %s2339_s14  ;;  %1841 = vrot.lane.b32.xlu0 %v1801_v5, %s2339_s14  ;;  %v1521_v58 = vmul.f32 %v3159_v38, %v2588_v25  ;;  %v1523_v25 = vmul.f32 %v3173_v11, %v2617_v39  ;;  %v1526_v39 = vmul.f32 %v3181_v21, %v2625_v44 }
 0x5a0   : > { %v3217_v51 = vpop.permute.xlu1 %1498  ;;  %v1528_v44 = vmul.f32 %v3193_v1, %v2647_v55  ;;  %v1530_v55 = vmul.f32 %v3205_v22, %v2668_v2 }
 0x5a1   : > { %v1590_v57 = vpop.permute.xlu0 %1589  ;;  %v1532_v2 = vmul.f32 %v3217_v51, %v2692_v15 }
 0x5a2   : > { %v1627_v63 = vmul.f32 %v1590_v57, %v2695_v16 }
 0x5a4   : > { %1669 = vrot.lane.b32.xlu0 %v1627_v63, %s2340_s17  ;;  %v1595_v30 = vpop.permute.xlu1 %1594 }
 0x5a5   : > { %v1628_v54 = vmul.f32 %v1595_v30, %v2692_v15  ;;  %v1781_v61 = vpop.permute.xlu0 %1780  ;;  %v1524_v30 = vmul.f32 %v3165_v52, %v2608_v35 }
 0x5a6   : > { %v1806_v40 = vmul.f32 %v1781_v61, %v2716_v32 }
 0x5a7   : > { %1671 = vrot.lane.b32.xlu1 %v1628_v54, %s2340_s17 }
 0x5a8   : > { %v1766_v37 = vpop.permute.xlu1 %1765 }
 0x5a9   : > { %v1803_v29 = vmul.f32 %v1766_v37, %v2695_v16  ;;  %v3225_v17 = vpop.permute.xlu0 %1503 }
 0x5ab   : > { %1847 = vrot.lane.b32.xlu1 %v1804_v7, %s2339_s14  ;;  %1845 = vrot.lane.b32.xlu0 %v1803_v29, %s2339_s14 }
 0x5ac   : > { %v3229_v41 = vpop.permute.xlu1 %1508 }
 0x5ad   : > { %v1600_v28 = vpop.permute.xlu0 %1599  ;;  %v1534_v15 = vmul.f32 %v3229_v41, %v2716_v32 }
 0x5ae   : > { %v1629_v42 = vmul.f32 %v1600_v28, %v2719_v33 }
 0x5b0   : > { %1673 = vrot.lane.b32.xlu0 %v1629_v42, %s2340_s17  ;;  %v1605_v6 = vpop.permute.xlu1 %1604 }
 0x5b1   : > { %v1630_v34 = vmul.f32 %v1605_v6, %v2716_v32 }
 0x5b3   : > { %1675 = vrot.lane.b32.xlu1 %v1630_v34, %s2340_s17  ;;  %v1525_v34 = vmul.f32 %v3178_v12, %v2629_v45  ;;  %v1527_v45 = vmul.f32 %v3189_v27, %v2650_v56  ;;  %v1529_v56 = vmul.f32 %v3201_v43, %v2671_v4  ;;  %v1531_v4 = vmul.f32 %v3213_v8, %v2695_v16 }
 0x5b4   : > { %v1776_v13 = vpop.permute.xlu1 %1775  ;;  %v1533_v16 = vmul.f32 %v3225_v17, %v2719_v33 }
 0x5b5   : > { %v1805_v19 = vmul.f32 %v1776_v13, %v2719_v33 }
 0x5b7   : > { %1851 = vrot.lane.b32.xlu1 %v1806_v40, %s2339_s14  ;;  %1849 = vrot.lane.b32.xlu0 %v1805_v19, %s2339_s14 }
 0x5b8   : > { %v3237_v53 = vpop.permute.xlu0 %1513  ;;  %v3241_v18 = vpop.permute.xlu1 %1518 }
 0x5b9   : > { %v1536_v33 = vmul.f32 %v3241_v18, %v2740_v48  ;;  %v1535_v32 = vmul.f32 %v3237_v53, %v2743_v49 }
 0x5bc   : > { %v1610_v47 = vpop.permute.xlu0 %1609  ;;  %v1615_v62 = vpop.permute.xlu1 %1614 }
 0x5bd   : > { %v1631_v3 = vmul.f32 %v1610_v47, %v2743_v49  ;;  %v1632_v31 = vmul.f32 %v1615_v62, %v2740_v48 }
 0x5bf   : > { %1677 = vrot.lane.b32.xlu0 %v1631_v3, %s2340_s17  ;;  %1679 = vrot.lane.b32.xlu1 %v1632_v31, %s2340_s17 }
 0x5c0   : > { %v1791_v0 = vpop.permute.xlu0 %1790  ;;  %v1786_v10 = vpop.permute.xlu1 %1785 }
 0x5c1   : > { %v1808_v60 = vmul.f32 %v1791_v0, %v2740_v48  ;;  %v1807_v14 = vmul.f32 %v1786_v10, %v2743_v49 }
 0x5c3   : > { %1853 = vrot.lane.b32.xlu0 %v1807_v14, %s2339_s14  ;;  %1855 = vrot.lane.b32.xlu1 %v1808_v60, %s2339_s14 }
 0x5d5   : > { %v1652_v46 = vpop.permute.xlu1 %1651 }
 0x5d6   : > { %v1698_v59 = vadd.f32 %v1652_v46, %v1522_v36 }
 0x5d9   : > { %v1828_v20 = vpop.permute.xlu1 %1827 }
 0x5da   : > { %v1874_v9 = vadd.f32 %v1828_v20, %v1698_v59 }
 0x5dc   : > { %v1890_v24 = vmax.f32 %v1874_v9, 0.0 }
 0x5dd   : > { %v1650_v50 = vpop.permute.xlu0 %1649 }
 0x5de   : > { %1906 = vst.msk [vmem:[%s3258_s20 + $0x8] sm:$0xff] %vm804_vm2, %v1890_v24  ;;  %v1697_v23 = vadd.f32 %v1650_v50, %v1521_v58 }
 0x5e1   : > { %v1826_v26 = vpop.permute.xlu0 %1825 }
 0x5e2   : > { %v1873_v5 = vadd.f32 %v1826_v26, %v1697_v23 }
 0x5e4   : > { %v1889_v57 = vmax.f32 %v1873_v5, 0.0 }
 0x5e5   : > { %v1656_v63 = vpop.permute.xlu1 %1655 }
 0x5e6   : > { %1905 = vst.msk [vmem:[%s3258_s20] sm:$0xff] %vm804_vm2, %v1889_v57  ;;  %v1700_v54 = vadd.f32 %v1656_v63, %v1524_v30  ;;  %v1654_v61 = vpop.permute.xlu0 %1653 }
 0x5e7   : > { %v1699_v7 = vadd.f32 %v1654_v61, %v1523_v25 }
 0x5e9   : > { %v1832_v37 = vpop.permute.xlu1 %1831 }
 0x5ea   : > { %v1876_v38 = vadd.f32 %v1832_v37, %v1700_v54 }
 0x5ec   : > { %v1892_v29 = vmax.f32 %v1876_v38, 0.0 }
 0x5ed   : > { %v1830_v28 = vpop.permute.xlu0 %1829 }
 0x5ee   : > { %1908 = vst.msk [vmem:[%s3258_s20 + $0x18] sm:$0xff] %vm804_vm2, %v1892_v29  ;;  %v1875_v42 = vadd.f32 %v1830_v28, %v1699_v7 }
 0x5f0   : > { %v1891_v6 = vmax.f32 %v1875_v42, 0.0 }
 0x5f2   : > { %1907 = vst.msk [vmem:[%s3258_s20 + $0x10] sm:$0xff] %vm804_vm2, %v1891_v6  ;;  %v1658_v35 = vpop.permute.xlu0 %1657 }
 0x5f3   : > { %v1701_v11 = vadd.f32 %v1658_v35, %v1525_v34 }
 0x5f5   : > { %v1660_v52 = vpop.permute.xlu1 %1659 }
 0x5f6   : > { %v1702_v13 = vadd.f32 %v1660_v52, %v1526_v39 }
 0x5f9   : > { %v1836_v40 = vpop.permute.xlu1 %1835  ;;  %v1834_v19 = vpop.permute.xlu0 %1833 }
 0x5fa   : > { %v1878_v47 = vadd.f32 %v1836_v40, %v1702_v13  ;;  %v1877_v3 = vadd.f32 %v1834_v19, %v1701_v11 }
 0x5fc   : > { %v1894_v62 = vmax.f32 %v1878_v47, 0.0  ;;  %v1893_v31 = vmax.f32 %v1877_v3, 0.0 }
 0x5fe   : > { %1910 = vst.msk [vmem:[%s3258_s20 + $0x28] sm:$0xff] %vm804_vm2, %v1894_v62  ;;  %1909 = vst.msk [vmem:[%s3258_s20 + $0x20] sm:$0xff] %vm804_vm2, %v1893_v31  ;;  %v1662_v0 = vpop.permute.xlu0 %1661 }
 0x5ff   : > { %v1703_v12 = vadd.f32 %v1662_v0, %v1527_v45 }
 0x601   : > { %v1664_v60 = vpop.permute.xlu1 %1663 }
 0x602   : > { %v1704_v21 = vadd.f32 %v1664_v60, %v1528_v44 }
 0x605   : > { %v1840_v10 = vpop.permute.xlu1 %1839  ;;  %v1838_v14 = vpop.permute.xlu0 %1837 }
 0x606   : > { %v1880_v46 = vadd.f32 %v1840_v10, %v1704_v21  ;;  %v1879_v36 = vadd.f32 %v1838_v14, %v1703_v12 }
 0x608   : > { %v1896_v59 = vmax.f32 %v1880_v46, 0.0  ;;  %v1895_v20 = vmax.f32 %v1879_v36, 0.0 }
 0x60a   : > { %1912 = vst.msk [vmem:[%s3258_s20 + $0x38] sm:$0xff] %vm804_vm2, %v1896_v59  ;;  %1911 = vst.msk [vmem:[%s3258_s20 + $0x30] sm:$0xff] %vm804_vm2, %v1895_v20  ;;  %v1666_v9 = vpop.permute.xlu0 %1665 }
 0x60b   : > { %v1705_v27 = vadd.f32 %v1666_v9, %v1529_v56 }
 0x60d   : > { %v1668_v24 = vpop.permute.xlu1 %1667 }
 0x60e   : > { %v1706_v1 = vadd.f32 %v1668_v24, %v1530_v55 }
 0x611   : > { %v1844_v50 = vpop.permute.xlu1 %1843  ;;  %v1842_v58 = vpop.permute.xlu0 %1841 }
 0x612   : > { %v1882_v23 = vadd.f32 %v1844_v50, %v1706_v1  ;;  %v1881_v26 = vadd.f32 %v1842_v58, %v1705_v27 }
 0x614   : > { %v1898_v5 = vmax.f32 %v1882_v23, 0.0  ;;  %v1897_v57 = vmax.f32 %v1881_v26, 0.0 }
 0x616   : > { %1914 = vst.msk [vmem:[%s3258_s20 + $0x48] sm:$0xff] %vm804_vm2, %v1898_v5  ;;  %1913 = vst.msk [vmem:[%s3258_s20 + $0x40] sm:$0xff] %vm804_vm2, %v1897_v57  ;;  %v1670_v63 = vpop.permute.xlu0 %1669 }
 0x617   : > { %v1707_v43 = vadd.f32 %v1670_v63, %v1531_v4 }
 0x619   : > { %v1672_v30 = vpop.permute.xlu1 %1671 }
 0x61a   : > { %v1708_v22 = vadd.f32 %v1672_v30, %v1532_v2 }
 0x61d   : > { %v1848_v54 = vpop.permute.xlu1 %1847  ;;  %v1846_v61 = vpop.permute.xlu0 %1845 }
 0x61e   : > { %v1884_v37 = vadd.f32 %v1848_v54, %v1708_v22  ;;  %v1883_v25 = vadd.f32 %v1846_v61, %v1707_v43 }
 0x620   : > { %v1900_v38 = vmax.f32 %v1884_v37, 0.0  ;;  %v1899_v7 = vmax.f32 %v1883_v25, 0.0 }
 0x622   : > { %1916 = vst.msk [vmem:[%s3258_s20 + $0x58] sm:$0xff] %vm804_vm2, %v1900_v38  ;;  %1915 = vst.msk [vmem:[%s3258_s20 + $0x50] sm:$0xff] %vm804_vm2, %v1899_v7  ;;  %v1674_v29 = vpop.permute.xlu0 %1673 }
 0x623   : > { %v1709_v8 = vadd.f32 %v1674_v29, %v1533_v16 }
 0x625   : > { %v1676_v28 = vpop.permute.xlu1 %1675 }
 0x626   : > { %v1710_v51 = vadd.f32 %v1676_v28, %v1534_v15 }
 0x629   : > { %v1852_v42 = vpop.permute.xlu1 %1851  ;;  %v1850_v6 = vpop.permute.xlu0 %1849 }
 0x62a   : > { %v1886_v35 = vadd.f32 %v1852_v42, %v1710_v51  ;;  %v1885_v52 = vadd.f32 %v1850_v6, %v1709_v8 }
 0x62c   : > { %v1902_v34 = vmax.f32 %v1886_v35, 0.0  ;;  %v1901_v39 = vmax.f32 %v1885_v52, 0.0 }
 0x62e   : > { %1918 = vst.msk [vmem:[%s3258_s20 + $0x68] sm:$0xff] %vm804_vm2, %v1902_v34  ;;  %1917 = vst.msk [vmem:[%s3258_s20 + $0x60] sm:$0xff] %vm804_vm2, %v1901_v39 }
 0x631   : > { %v1678_v11 = vpop.permute.xlu0 %1677  ;;  %v1680_v13 = vpop.permute.xlu1 %1679 }
 0x632   : > { %v1712_v17 = vadd.f32 %v1680_v13, %v1536_v33  ;;  %v1711_v41 = vadd.f32 %v1678_v11, %v1535_v32 }
 0x635   : > { %v1856_v40 = vpop.permute.xlu1 %1855  ;;  %v1854_v19 = vpop.permute.xlu0 %1853 }
 0x636   : > { %v1888_v47 = vadd.f32 %v1856_v40, %v1712_v17  ;;  %v1887_v3 = vadd.f32 %v1854_v19, %v1711_v41 }
 0x638   : > { %v1904_v62 = vmax.f32 %v1888_v47, 0.0  ;;  %v1903_v31 = vmax.f32 %v1887_v3, 0.0 }
 0x63a   : > { %1920 = vst.msk [vmem:[%s3258_s20 + $0x78] sm:$0xff] %vm804_vm2, %v1904_v62  ;;  %1919 = vst.msk [vmem:[%s3258_s20 + $0x70] sm:$0xff] %vm804_vm2, %v1903_v31 }
 0x63b PF: > { %s18_s23 = sadd.s32 1, %s2334_s23  }
 0x63c   : > { %p15_p4 = scmp.ge.s32.totalorder %s18_s23, 4  }
 0x63e   :  { %17 = sbr.rel (!%p15_p4) target bundleno = 3 (0x3), region = 74 }

</bundles_post_ra>
